<compile_context>
chip_gen: v5e
topology: v5e:2x2
jax: 0.10.0
libtpu: 0.0.40
codegen_flags: <defaults>
</compile_context>

<pallas_src>
import functools

import jax
import jax.numpy as jnp
from jax.experimental import pallas as pl
from jax.experimental.pallas import tpu as pltpu

EPS = 1e-5
LANE = 128


def _round_up(v, m):
    return (v + m - 1) // m * m


# -----------------------------------------------------------------------------
# Kernel
# -----------------------------------------------------------------------------
def _gsage_kernel(a_ref, x_ref,
                  w0c_ref, b0_ref, w1c_ref, b1_ref, w2c_ref, b2_ref, wsc_ref,
                  ln0w_ref, ln0b_ref, ln1w_ref, ln1b_ref, ln2w_ref, ln2b_ref,
                  alpha_ref,
                  out_ref, *, inv_hid, inv_emb, hid_p):
    A = a_ref[0]          # (N, N)   bf16 row-normalized adjacency (this graph)
    x = x_ref[0]          # (N, FIN_P) f32, zero-padded feature lanes
    wdt = w0c_ref.dtype   # MXU compute dtype (bf16)
    x_bf = x.astype(wdt)  # cast once, reused for layer-1 SAGE and the skip matmul

    # PReLU slopes live in SMEM (scalar path); read once.
    a0 = alpha_ref[0]
    a1 = alpha_ref[1]
    a2 = alpha_ref[2]

    def sage(h_bf, w_cat_ref, b_ref):
        # mean aggregation (A @ h) then ONE fused matmul  [agg | h] @ [Wl ; Wr] + b
        agg = jnp.dot(A, h_bf, preferred_element_type=jnp.float32)
        hc = jnp.concatenate([agg.astype(wdt), h_bf], axis=-1)       # bf16 concat
        return jnp.dot(hc, w_cat_ref[...], preferred_element_type=jnp.float32) + b_ref[...]

    def graph_ln(h, w_ref, b_ref, inv_cnt):
        # PyG LayerNorm, mode='graph', batch=None: stats over ALL (real) elements.
        # Single pass: sum and sum-of-squares; divide by the TRUE element count
        # (padded lanes are exactly zero so they do not perturb the sums).
        s1 = jnp.sum(h, keepdims=True)           # (1, 1)
        s2 = jnp.sum(h * h, keepdims=True)       # (1, 1)
        mu = s1 * inv_cnt
        var = jnp.maximum(s2 * inv_cnt - mu * mu, 0.0)
        inv_std = pl.reciprocal(jnp.sqrt(var) + EPS, approx=True)    # EUP slot
        # padded lanes: (0 - mu)*inv_std * w_pad(=0) + b_pad(=0) -> stay exactly 0
        return (h - mu) * inv_std * w_ref[...] + b_ref[...]

    def prelu(h, a):
        return jnp.where(h >= 0.0, h, a * h)

    # ---- layer 1 ----
    h1 = prelu(graph_ln(sage(x_bf, w0c_ref, b0_ref), ln0w_ref, ln0b_ref, inv_hid), a0)

    # ---- both skip projections in ONE matmul:  x @ [Ws0 | Ws1] ----
    xs = jnp.dot(x_bf, wsc_ref[...], preferred_element_type=jnp.float32)
    x_skip_1 = xs[:, :hid_p]
    x_skip_2 = xs[:, hid_p:]

    # ---- layer 2 with skip from input ----
    h2_in = (h1 + x_skip_1).astype(wdt)
    h2 = prelu(graph_ln(sage(h2_in, w1c_ref, b1_ref), ln1w_ref, ln1b_ref, inv_hid), a1)

    # ---- layer 3 with skip from input and h1 ----
    h3_in = (h1 + h2 + x_skip_2).astype(wdt)
    ret = prelu(graph_ln(sage(h3_in, w2c_ref, b2_ref), ln2w_ref, ln2b_ref, inv_emb), a2)

    out_ref[0] = ret.astype(out_ref.dtype)   # lane-dense (N, 128) store


# -----------------------------------------------------------------------------
# Wrapper
# -----------------------------------------------------------------------------
def graphsage_gcn_forward(a_norm, x, params, *, hidden_size, embedding_size):
    """Fused forward over a batch of graphs.

    a_norm : (G, N, N) or (N, N)  row-normalized adjacency, A[dst, src] = 1/deg_in(dst)
    x      : (G, N, FIN) or (N, FIN) node features
    params : packed/padded params from _pack_params()
    """
    squeeze = a_norm.ndim == 2
    if squeeze:
        a_norm, x = a_norm[None], x[None]
    g, n, _ = a_norm.shape
    fin = x.shape[-1]

    fin_p = params["ws_c"].shape[0]
    hid_p = params["b0"].shape[1]
    emb_p = params["b2"].shape[1]
    wdtype = params["w0c"].dtype

    # bf16 adjacency (halves DMA bytes, native MXU rate); f32 padded features.
    a_w = a_norm.astype(wdtype)
    x_p = jnp.pad(x.astype(jnp.float32), ((0, 0), (0, 0), (0, fin_p - fin)))

    weight_keys = ["w0c", "b0", "w1c", "b1", "w2c", "b2", "ws_c",
                   "ln0_w", "ln0_b", "ln1_w", "ln1_b", "ln2_w", "ln2_b"]
    weight_ops = [params[k] for k in weight_keys]

    # ---- VMEM budget guard (fully-resident, per-graph design) ----------------
    itm_w = jnp.dtype(wdtype).itemsize
    wbytes = sum(int(w.size) * w.dtype.itemsize for w in weight_ops)
    per_step = (2 * (n * n * itm_w + n * fin_p * 4 + n * emb_p * 4)   # double-buffered blocks
                + wbytes
                + 12 * n * 2 * hid_p * 4)                             # transient activations headroom
    assert per_step < 48 * 2 ** 20, (
        "fully-VMEM-resident GraphSAGE kernel exceeds the v7x VMEM budget at this N; "
        "TODO(synk): row-tile A over a grid and split the graph-mode LayerNorm into "
        "partial-sum + normalize passes for large graphs")
    vmem_limit = int(min(64 * 2 ** 20, max(32 * 2 ** 20, 4 * per_step)))

    # ---- cost estimate --------------------------------------------------------
    flops_per_g = (2 * n * n * (fin_p + 2 * hid_p)            # 3 aggregations A @ h
                   + 2 * n * (2 * fin_p) * hid_p              # fused SAGE matmul, layer 1
                   + 2 * n * (2 * hid_p) * hid_p              # layer 2
                   + 2 * n * (2 * hid_p) * emb_p              # layer 3
                   + 2 * n * fin_p * (2 * hid_p))             # fused skip projections
    bytes_acc = (int(a_w.size) * itm_w + int(x_p.size) * 4 + wbytes
                 + int(params["alphas"].size) * 4 + g * n * emb_p * 4)
    cost = pl.CostEstimate(flops=int(g * flops_per_g), transcendentals=int(6 * g),
                           bytes_accessed=int(bytes_acc))

    kern = functools.partial(_gsage_kernel,
                             inv_hid=1.0 / float(n * hidden_size),
                             inv_emb=1.0 / float(n * embedding_size),
                             hid_p=hid_p)

    in_specs = (
        [pl.BlockSpec((1, n, n), lambda gi: (gi, 0, 0)),          # A (per graph)
         pl.BlockSpec((1, n, fin_p), lambda gi: (gi, 0, 0))]      # x (per graph)
        + [pl.BlockSpec(w.shape, lambda gi: (0, 0)) for w in weight_ops]   # weights resident
        + [pl.BlockSpec(memory_space=pltpu.MemorySpace.SMEM)]     # PReLU alphas -> SMEM scalars
    )
    out_spec = pl.BlockSpec((1, n, emb_p), lambda gi: (gi, 0, 0))

    out = pl.pallas_call(
        kern,
        out_shape=jax.ShapeDtypeStruct((g, n, emb_p), jnp.float32),
        grid=(g,),
        in_specs=in_specs,
        out_specs=out_spec,
        compiler_params=pltpu.CompilerParams(
            dimension_semantics=("parallel",),       # graphs split across TCs (v7x megacore)
            vmem_limit_bytes=vmem_limit),
        cost_estimate=cost,
    )(a_w, x_p, *weight_ops, params["alphas"])

    out = out[..., :embedding_size]
    if squeeze:
        out = out[0]
    return out


# -----------------------------------------------------------------------------
# Parameter construction / packing
# -----------------------------------------------------------------------------
def _make_raw_params(key, fin, hid, emb):
    """Raw params in (in, out) layout (PyTorch Linear stores (out, in); pre-transposed)."""
    ks = jax.random.split(key, 8)

    def lin(k, out_dim, in_dim):
        w = jax.random.normal(k, (out_dim, in_dim), jnp.float32) * (1.0 / jnp.sqrt(in_dim))
        return jnp.transpose(w)

    return {
        "w0l": lin(ks[0], hid, fin), "b0": jnp.full((1, hid), 0.01, jnp.float32), "w0r": lin(ks[1], hid, fin),
        "w1l": lin(ks[2], hid, hid), "b1": jnp.full((1, hid), 0.01, jnp.float32), "w1r": lin(ks[3], hid, hid),
        "w2l": lin(ks[4], emb, hid), "b2": jnp.full((1, emb), 0.01, jnp.float32), "w2r": lin(ks[5], emb, hid),
        "ws0": lin(ks[6], hid, fin), "ws1": lin(ks[7], hid, fin),
        "ln0_w": jnp.ones((1, hid), jnp.float32), "ln0_b": jnp.zeros((1, hid), jnp.float32),
        "ln1_w": jnp.ones((1, hid), jnp.float32), "ln1_b": jnp.zeros((1, hid), jnp.float32),
        "ln2_w": jnp.ones((1, emb), jnp.float32), "ln2_b": jnp.zeros((1, emb), jnp.float32),
        "a0": jnp.float32(0.25), "a1": jnp.float32(0.25), "a2": jnp.float32(0.25),   # PReLU reset value
    }


def _pack_params(raw, fin, hid, emb, *, wdtype=jnp.bfloat16):
    """Zero-pad feature dims to 128 lanes and pack fused weights; cast matmul weights to bf16."""
    fin_p, hid_p, emb_p = _round_up(fin, LANE), _round_up(hid, LANE), _round_up(emb, LANE)

    def pad_w(w, rows, cols):
        return jnp.pad(w, ((0, rows - w.shape[0]), (0, cols - w.shape[1])))

    def pad_row(v, cols):
        return jnp.pad(v, ((0, 0), (0, cols - v.shape[1])))

    w0c = jnp.concatenate([pad_w(raw["w0l"], fin_p, hid_p), pad_w(raw["w0r"], fin_p, hid_p)], axis=0)
    w1c = jnp.concatenate([pad_w(raw["w1l"], hid_p, hid_p), pad_w(raw["w1r"], hid_p, hid_p)], axis=0)
    w2c = jnp.concatenate([pad_w(raw["w2l"], hid_p, emb_p), pad_w(raw["w2r"], hid_p, emb_p)], axis=0)
    wsc = jnp.concatenate([pad_w(raw["ws0"], fin_p, hid_p), pad_w(raw["ws1"], fin_p, hid_p)], axis=1)

    return {
        "w0c": w0c.astype(wdtype), "b0": pad_row(raw["b0"], hid_p),
        "w1c": w1c.astype(wdtype), "b1": pad_row(raw["b1"], hid_p),
        "w2c": w2c.astype(wdtype), "b2": pad_row(raw["b2"], emb_p),
        "ws_c": wsc.astype(wdtype),
        "ln0_w": pad_row(raw["ln0_w"], hid_p), "ln0_b": pad_row(raw["ln0_b"], hid_p),
        "ln1_w": pad_row(raw["ln1_w"], hid_p), "ln1_b": pad_row(raw["ln1_b"], hid_p),
        "ln2_w": pad_row(raw["ln2_w"], emb_p), "ln2_b": pad_row(raw["ln2_b"], emb_p),
        "alphas": jnp.stack([raw["a0"], raw["a1"], raw["a2"]]).astype(jnp.float32),   # (3,), SMEM
    }


# -----------------------------------------------------------------------------
# Plain-JAX reference mirroring the kernel math (same padding/dtypes)
# -----------------------------------------------------------------------------
def _ref_single(a_bf, x_p, p, inv_hid, inv_emb, hid_p):
    wdt = p["w0c"].dtype

    def sage(h_bf, w_cat, b):
        agg = jnp.dot(a_bf, h_bf, preferred_element_type=jnp.float32)
        hc = jnp.concatenate([agg.astype(wdt), h_bf], axis=-1)
        return jnp.dot(hc, w_cat, preferred_element_type=jnp.float32) + b

    def ln(h, w, b, inv_cnt):
        s1 = jnp.sum(h)
        s2 = jnp.sum(h * h)
        mu = s1 * inv_cnt
        var = jnp.maximum(s2 * inv_cnt - mu * mu, 0.0)
        return (h - mu) / (jnp.sqrt(var) + EPS) * w + b

    def prelu(h, a):
        return jnp.where(h >= 0.0, h, a * h)

    al = p["alphas"]
    x_bf = x_p.astype(wdt)
    h1 = prelu(ln(sage(x_bf, p["w0c"], p["b0"]), p["ln0_w"], p["ln0_b"], inv_hid), al[0])
    xs = jnp.dot(x_bf, p["ws_c"], preferred_element_type=jnp.float32)
    h2 = prelu(ln(sage((h1 + xs[:, :hid_p]).astype(wdt), p["w1c"], p["b1"]),
                  p["ln1_w"], p["ln1_b"], inv_hid), al[1])
    ret = prelu(ln(sage((h1 + h2 + xs[:, hid_p:]).astype(wdt), p["w2c"], p["b2"]),
                   p["ln2_w"], p["ln2_b"], inv_emb), al[2])
    return ret


# -----------------------------------------------------------------------------
if __name__ == "__main__":
    G, N, FIN, HID, EMB = 2, 64, 16, 32, 16

    key = jax.random.PRNGKey(0)
    k_x, k_adj, k_p = jax.random.split(key, 3)

    # Node features for G graphs.
    x = jax.random.normal(k_x, (G, N, FIN), jnp.float32)

    # Random directed graphs -> dense binary adjacency A[dst, src], then
    # row-normalize for mean aggregation (isolated nodes aggregate to 0,
    # matching scatter-mean semantics).
    adj = (jax.random.uniform(k_adj, (G, N, N)) < 0.1).astype(jnp.float32)
    adj = adj * (1.0 - jnp.eye(N, dtype=jnp.float32))            # no self loops
    deg = jnp.sum(adj, axis=-1, keepdims=True)
    a_norm = jnp.where(deg > 0, adj / jnp.maximum(deg, 1.0), 0.0)

    raw = _make_raw_params(k_p, FIN, HID, EMB)
    params = _pack_params(raw, FIN, HID, EMB)

    out = graphsage_gcn_forward(a_norm, x, params, hidden_size=HID, embedding_size=EMB)
    out = jax.block_until_ready(out)
    assert out.shape == (G, N, EMB)

    # Reference (mirrors the kernel's padding / bf16-weight math in plain JAX).
    fin_p = params["ws_c"].shape[0]
    hid_p = params["b0"].shape[1]
    a_bf = a_norm.astype(params["w0c"].dtype)
    x_pad = jnp.pad(x, ((0, 0), (0, 0), (0, fin_p - FIN)))
    ref = jnp.stack([
        _ref_single(a_bf[gi], x_pad[gi], params, 1.0 / (N * HID), 1.0 / (N * EMB), hid_p)
        for gi in range(G)
    ])[..., :EMB]

    assert jnp.allclose(out, ref, atol=1e-2, rtol=1e-2), "mismatch vs reference"

    print("KERNEL_OK")
</pallas_src>

<mosaic_0001>
module attributes {stable_mosaic.version = 11 : i64} {
  func.func @_gsage_kernel(%arg0: i32, %arg1: memref<1x64x64xbf16, #tpu.memory_space<vmem>>, %arg2: memref<1x64x128xf32, #tpu.memory_space<vmem>>, %arg3: memref<256x128xbf16, #tpu.memory_space<vmem>>, %arg4: memref<1x128xf32, #tpu.memory_space<vmem>>, %arg5: memref<256x128xbf16, #tpu.memory_space<vmem>>, %arg6: memref<1x128xf32, #tpu.memory_space<vmem>>, %arg7: memref<256x128xbf16, #tpu.memory_space<vmem>>, %arg8: memref<1x128xf32, #tpu.memory_space<vmem>>, %arg9: memref<128x256xbf16, #tpu.memory_space<vmem>>, %arg10: memref<1x128xf32, #tpu.memory_space<vmem>>, %arg11: memref<1x128xf32, #tpu.memory_space<vmem>>, %arg12: memref<1x128xf32, #tpu.memory_space<vmem>>, %arg13: memref<1x128xf32, #tpu.memory_space<vmem>>, %arg14: memref<1x128xf32, #tpu.memory_space<vmem>>, %arg15: memref<1x128xf32, #tpu.memory_space<vmem>>, %arg16: memref<3xf32, #tpu.memory_space<smem>>, %arg17: memref<1x64x128xf32, #tpu.memory_space<vmem>>) attributes {dimension_semantics = [#tpu.dimension_semantics<parallel>], iteration_bounds = array<i64: 2>, scalar_prefetch = 0 : i64, scratch_operands = 0 : i64, tpu.core_type = #tpu.core_type<tc>, window_params = [{transform_indices = @transform_0, window_bounds = array<i64: 1, 64, 64>}, {transform_indices = @transform_1, window_bounds = array<i64: 1, 64, 128>}, {pipeline_mode = #tpu.pipeline_mode<synchronous>, transform_indices = @transform_2, window_bounds = array<i64: 256, 128>}, {pipeline_mode = #tpu.pipeline_mode<synchronous>, transform_indices = @transform_3, window_bounds = array<i64: 1, 128>}, {pipeline_mode = #tpu.pipeline_mode<synchronous>, transform_indices = @transform_4, window_bounds = array<i64: 256, 128>}, {pipeline_mode = #tpu.pipeline_mode<synchronous>, transform_indices = @transform_5, window_bounds = array<i64: 1, 128>}, {pipeline_mode = #tpu.pipeline_mode<synchronous>, transform_indices = @transform_6, window_bounds = array<i64: 256, 128>}, {pipeline_mode = #tpu.pipeline_mode<synchronous>, transform_indices = @transform_7, window_bounds = array<i64: 1, 128>}, {pipeline_mode = #tpu.pipeline_mode<synchronous>, transform_indices = @transform_8, window_bounds = array<i64: 128, 256>}, {pipeline_mode = #tpu.pipeline_mode<synchronous>, transform_indices = @transform_9, window_bounds = array<i64: 1, 128>}, {pipeline_mode = #tpu.pipeline_mode<synchronous>, transform_indices = @transform_10, window_bounds = array<i64: 1, 128>}, {pipeline_mode = #tpu.pipeline_mode<synchronous>, transform_indices = @transform_11, window_bounds = array<i64: 1, 128>}, {pipeline_mode = #tpu.pipeline_mode<synchronous>, transform_indices = @transform_12, window_bounds = array<i64: 1, 128>}, {pipeline_mode = #tpu.pipeline_mode<synchronous>, transform_indices = @transform_13, window_bounds = array<i64: 1, 128>}, {pipeline_mode = #tpu.pipeline_mode<synchronous>, transform_indices = @transform_14, window_bounds = array<i64: 1, 128>}, {transform_indices = @transform_15, window_bounds = array<i64: 3>}, {transform_indices = @transform_16, window_bounds = array<i64: 1, 64, 128>}]} {
    %c0 = arith.constant 0 : index
    %c0_0 = arith.constant 0 : index
    %c0_1 = arith.constant 0 : index
    %0 = vector.load %arg1[%c0, %c0_0, %c0_1] : memref<1x64x64xbf16, #tpu.memory_space<vmem>>, vector<1x64x64xbf16>
    %1 = vector.shape_cast %0 : vector<1x64x64xbf16> to vector<64x64xbf16>
    %c0_2 = arith.constant 0 : index
    %c0_3 = arith.constant 0 : index
    %c0_4 = arith.constant 0 : index
    %2 = vector.load %arg2[%c0_2, %c0_3, %c0_4] : memref<1x64x128xf32, #tpu.memory_space<vmem>>, vector<1x64x128xf32>
    %3 = vector.shape_cast %2 : vector<1x64x128xf32> to vector<64x128xf32>
    %4 = arith.truncf %3 : vector<64x128xf32> to vector<64x128xbf16>
    %c0_5 = arith.constant 0 : index
    %5 = memref.load %arg16[%c0_5] : memref<3xf32, #tpu.memory_space<smem>>
    %c1 = arith.constant 1 : index
    %6 = memref.load %arg16[%c1] : memref<3xf32, #tpu.memory_space<smem>>
    %c2 = arith.constant 2 : index
    %7 = memref.load %arg16[%c2] : memref<3xf32, #tpu.memory_space<smem>>
    %cst = arith.constant dense<0.000000e+00> : vector<64x128xf32>
    %8 = tpu.matmul %1, %4, %cst {dimension_numbers = #tpu.dot_dimension_numbers<[1], [0], [0], [1], [0, 0, 1, 1], [], []>} : vector<64x64xbf16>, vector<64x128xbf16>, vector<64x128xf32> -> vector<64x128xf32>
    %9 = arith.truncf %8 : vector<64x128xf32> to vector<64x128xbf16>
    %10 = tpu.concatenate %9, %4 in 1 : vector<64x128xbf16>, vector<64x128xbf16> -> vector<64x256xbf16>
    %c0_6 = arith.constant 0 : index
    %c0_7 = arith.constant 0 : index
    %11 = vector.load %arg3[%c0_6, %c0_7] : memref<256x128xbf16, #tpu.memory_space<vmem>>, vector<256x128xbf16>
    %cst_8 = arith.constant dense<0.000000e+00> : vector<64x128xf32>
    %12 = tpu.matmul %10, %11, %cst_8 {dimension_numbers = #tpu.dot_dimension_numbers<[1], [0], [0], [1], [0, 0, 1, 1], [], []>} : vector<64x256xbf16>, vector<256x128xbf16>, vector<64x128xf32> -> vector<64x128xf32>
    %c0_9 = arith.constant 0 : index
    %c0_10 = arith.constant 0 : index
    %13 = vector.load %arg4[%c0_9, %c0_10] : memref<1x128xf32, #tpu.memory_space<vmem>>, vector<1x128xf32>
    %14 = vector.broadcast %13 : vector<1x128xf32> to vector<64x128xf32>
    %15 = arith.addf %12, %14 : vector<64x128xf32>
    %16 = vector.shape_cast %15 : vector<64x128xf32> to vector<1x64x128xf32>
    %cst_11 = arith.constant dense<0.000000e+00> : vector<1xf32>
    %17 = vector.multi_reduction <add>, %16, %cst_11 [1, 2] : vector<1x64x128xf32> to vector<1xf32>
    %18 = vector.shape_cast %17 : vector<1xf32> to vector<1x1x1xf32>
    %19 = vector.extract %18[0, 0, 0] : f32 from vector<1x1x1xf32>
    %20 = vector.broadcast %19 : f32 to vector<1x1xf32>
    %21 = arith.mulf %15, %15 : vector<64x128xf32>
    %22 = vector.shape_cast %21 : vector<64x128xf32> to vector<1x64x128xf32>
    %cst_12 = arith.constant dense<0.000000e+00> : vector<1xf32>
    %23 = vector.multi_reduction <add>, %22, %cst_12 [1, 2] : vector<1x64x128xf32> to vector<1xf32>
    %24 = vector.shape_cast %23 : vector<1xf32> to vector<1x1x1xf32>
    %25 = vector.extract %24[0, 0, 0] : f32 from vector<1x1x1xf32>
    %26 = vector.broadcast %25 : f32 to vector<1x1xf32>
    %cst_13 = arith.constant 4.8828125E-4 : f32
    %27 = vector.broadcast %cst_13 : f32 to vector<1x1xf32>
    %28 = arith.mulf %20, %27 : vector<1x1xf32>
    %cst_14 = arith.constant 4.8828125E-4 : f32
    %29 = vector.broadcast %cst_14 : f32 to vector<1x1xf32>
    %30 = arith.mulf %26, %29 : vector<1x1xf32>
    %31 = arith.mulf %28, %28 : vector<1x1xf32>
    %32 = arith.subf %30, %31 : vector<1x1xf32>
    %cst_15 = arith.constant 0.000000e+00 : f32
    %33 = vector.broadcast %cst_15 : f32 to vector<1x1xf32>
    %34 = arith.maximumf %32, %33 : vector<1x1xf32>
    %35 = math.sqrt %34 : vector<1x1xf32>
    %cst_16 = arith.constant 9.99999974E-6 : f32
    %36 = vector.broadcast %cst_16 : f32 to vector<1x1xf32>
    %37 = arith.addf %35, %36 : vector<1x1xf32>
    %38 = tpu.reciprocal %37 {approx = true} : vector<1x1xf32> -> vector<1x1xf32>
    %39 = vector.broadcast %28 : vector<1x1xf32> to vector<64x128xf32>
    %40 = arith.subf %15, %39 : vector<64x128xf32>
    %41 = vector.broadcast %38 : vector<1x1xf32> to vector<64x128xf32>
    %42 = arith.mulf %40, %41 : vector<64x128xf32>
    %c0_17 = arith.constant 0 : index
    %c0_18 = arith.constant 0 : index
    %43 = vector.load %arg10[%c0_17, %c0_18] : memref<1x128xf32, #tpu.memory_space<vmem>>, vector<1x128xf32>
    %44 = vector.broadcast %43 : vector<1x128xf32> to vector<64x128xf32>
    %45 = arith.mulf %42, %44 : vector<64x128xf32>
    %c0_19 = arith.constant 0 : index
    %c0_20 = arith.constant 0 : index
    %46 = vector.load %arg11[%c0_19, %c0_20] : memref<1x128xf32, #tpu.memory_space<vmem>>, vector<1x128xf32>
    %47 = vector.broadcast %46 : vector<1x128xf32> to vector<64x128xf32>
    %48 = arith.addf %45, %47 : vector<64x128xf32>
    %cst_21 = arith.constant 0.000000e+00 : f32
    %49 = vector.broadcast %cst_21 : f32 to vector<64x128xf32>
    %50 = arith.cmpf oge, %48, %49 : vector<64x128xf32>
    %51 = vector.broadcast %5 : f32 to vector<64x128xf32>
    %52 = arith.mulf %51, %48 : vector<64x128xf32>
    %53 = arith.select %50, %48, %52 : vector<64x128xi1>, vector<64x128xf32>
    %c0_22 = arith.constant 0 : index
    %c0_23 = arith.constant 0 : index
    %54 = vector.load %arg9[%c0_22, %c0_23] : memref<128x256xbf16, #tpu.memory_space<vmem>>, vector<128x256xbf16>
    %cst_24 = arith.constant dense<0.000000e+00> : vector<64x256xf32>
    %55 = tpu.matmul %4, %54, %cst_24 {dimension_numbers = #tpu.dot_dimension_numbers<[1], [0], [0], [1], [0, 0, 1, 1], [], []>} : vector<64x128xbf16>, vector<128x256xbf16>, vector<64x256xf32> -> vector<64x256xf32>
    %56 = vector.extract_strided_slice %55 {offsets = [0, 0], sizes = [64, 128], strides = [1, 1]} : vector<64x256xf32> to vector<64x128xf32>
    %57 = vector.extract_strided_slice %55 {offsets = [0, 128], sizes = [64, 128], strides = [1, 1]} : vector<64x256xf32> to vector<64x128xf32>
    %58 = arith.addf %53, %56 : vector<64x128xf32>
    %59 = arith.truncf %58 : vector<64x128xf32> to vector<64x128xbf16>
    %cst_25 = arith.constant dense<0.000000e+00> : vector<64x128xf32>
    %60 = tpu.matmul %1, %59, %cst_25 {dimension_numbers = #tpu.dot_dimension_numbers<[1], [0], [0], [1], [0, 0, 1, 1], [], []>} : vector<64x64xbf16>, vector<64x128xbf16>, vector<64x128xf32> -> vector<64x128xf32>
    %61 = arith.truncf %60 : vector<64x128xf32> to vector<64x128xbf16>
    %62 = tpu.concatenate %61, %59 in 1 : vector<64x128xbf16>, vector<64x128xbf16> -> vector<64x256xbf16>
    %c0_26 = arith.constant 0 : index
    %c0_27 = arith.constant 0 : index
    %63 = vector.load %arg5[%c0_26, %c0_27] : memref<256x128xbf16, #tpu.memory_space<vmem>>, vector<256x128xbf16>
    %cst_28 = arith.constant dense<0.000000e+00> : vector<64x128xf32>
    %64 = tpu.matmul %62, %63, %cst_28 {dimension_numbers = #tpu.dot_dimension_numbers<[1], [0], [0], [1], [0, 0, 1, 1], [], []>} : vector<64x256xbf16>, vector<256x128xbf16>, vector<64x128xf32> -> vector<64x128xf32>
    %c0_29 = arith.constant 0 : index
    %c0_30 = arith.constant 0 : index
    %65 = vector.load %arg6[%c0_29, %c0_30] : memref<1x128xf32, #tpu.memory_space<vmem>>, vector<1x128xf32>
    %66 = vector.broadcast %65 : vector<1x128xf32> to vector<64x128xf32>
    %67 = arith.addf %64, %66 : vector<64x128xf32>
    %68 = vector.shape_cast %67 : vector<64x128xf32> to vector<1x64x128xf32>
    %cst_31 = arith.constant dense<0.000000e+00> : vector<1xf32>
    %69 = vector.multi_reduction <add>, %68, %cst_31 [1, 2] : vector<1x64x128xf32> to vector<1xf32>
    %70 = vector.shape_cast %69 : vector<1xf32> to vector<1x1x1xf32>
    %71 = vector.extract %70[0, 0, 0] : f32 from vector<1x1x1xf32>
    %72 = vector.broadcast %71 : f32 to vector<1x1xf32>
    %73 = arith.mulf %67, %67 : vector<64x128xf32>
    %74 = vector.shape_cast %73 : vector<64x128xf32> to vector<1x64x128xf32>
    %cst_32 = arith.constant dense<0.000000e+00> : vector<1xf32>
    %75 = vector.multi_reduction <add>, %74, %cst_32 [1, 2] : vector<1x64x128xf32> to vector<1xf32>
    %76 = vector.shape_cast %75 : vector<1xf32> to vector<1x1x1xf32>
    %77 = vector.extract %76[0, 0, 0] : f32 from vector<1x1x1xf32>
    %78 = vector.broadcast %77 : f32 to vector<1x1xf32>
    %cst_33 = arith.constant 4.8828125E-4 : f32
    %79 = vector.broadcast %cst_33 : f32 to vector<1x1xf32>
    %80 = arith.mulf %72, %79 : vector<1x1xf32>
    %cst_34 = arith.constant 4.8828125E-4 : f32
    %81 = vector.broadcast %cst_34 : f32 to vector<1x1xf32>
    %82 = arith.mulf %78, %81 : vector<1x1xf32>
    %83 = arith.mulf %80, %80 : vector<1x1xf32>
    %84 = arith.subf %82, %83 : vector<1x1xf32>
    %cst_35 = arith.constant 0.000000e+00 : f32
    %85 = vector.broadcast %cst_35 : f32 to vector<1x1xf32>
    %86 = arith.maximumf %84, %85 : vector<1x1xf32>
    %87 = math.sqrt %86 : vector<1x1xf32>
    %cst_36 = arith.constant 9.99999974E-6 : f32
    %88 = vector.broadcast %cst_36 : f32 to vector<1x1xf32>
    %89 = arith.addf %87, %88 : vector<1x1xf32>
    %90 = tpu.reciprocal %89 {approx = true} : vector<1x1xf32> -> vector<1x1xf32>
    %91 = vector.broadcast %80 : vector<1x1xf32> to vector<64x128xf32>
    %92 = arith.subf %67, %91 : vector<64x128xf32>
    %93 = vector.broadcast %90 : vector<1x1xf32> to vector<64x128xf32>
    %94 = arith.mulf %92, %93 : vector<64x128xf32>
    %c0_37 = arith.constant 0 : index
    %c0_38 = arith.constant 0 : index
    %95 = vector.load %arg12[%c0_37, %c0_38] : memref<1x128xf32, #tpu.memory_space<vmem>>, vector<1x128xf32>
    %96 = vector.broadcast %95 : vector<1x128xf32> to vector<64x128xf32>
    %97 = arith.mulf %94, %96 : vector<64x128xf32>
    %c0_39 = arith.constant 0 : index
    %c0_40 = arith.constant 0 : index
    %98 = vector.load %arg13[%c0_39, %c0_40] : memref<1x128xf32, #tpu.memory_space<vmem>>, vector<1x128xf32>
    %99 = vector.broadcast %98 : vector<1x128xf32> to vector<64x128xf32>
    %100 = arith.addf %97, %99 : vector<64x128xf32>
    %cst_41 = arith.constant 0.000000e+00 : f32
    %101 = vector.broadcast %cst_41 : f32 to vector<64x128xf32>
    %102 = arith.cmpf oge, %100, %101 : vector<64x128xf32>
    %103 = vector.broadcast %6 : f32 to vector<64x128xf32>
    %104 = arith.mulf %103, %100 : vector<64x128xf32>
    %105 = arith.select %102, %100, %104 : vector<64x128xi1>, vector<64x128xf32>
    %106 = arith.addf %53, %105 : vector<64x128xf32>
    %107 = arith.addf %106, %57 : vector<64x128xf32>
    %108 = arith.truncf %107 : vector<64x128xf32> to vector<64x128xbf16>
    %cst_42 = arith.constant dense<0.000000e+00> : vector<64x128xf32>
    %109 = tpu.matmul %1, %108, %cst_42 {dimension_numbers = #tpu.dot_dimension_numbers<[1], [0], [0], [1], [0, 0, 1, 1], [], []>} : vector<64x64xbf16>, vector<64x128xbf16>, vector<64x128xf32> -> vector<64x128xf32>
    %110 = arith.truncf %109 : vector<64x128xf32> to vector<64x128xbf16>
    %111 = tpu.concatenate %110, %108 in 1 : vector<64x128xbf16>, vector<64x128xbf16> -> vector<64x256xbf16>
    %c0_43 = arith.constant 0 : index
    %c0_44 = arith.constant 0 : index
    %112 = vector.load %arg7[%c0_43, %c0_44] : memref<256x128xbf16, #tpu.memory_space<vmem>>, vector<256x128xbf16>
    %cst_45 = arith.constant dense<0.000000e+00> : vector<64x128xf32>
    %113 = tpu.matmul %111, %112, %cst_45 {dimension_numbers = #tpu.dot_dimension_numbers<[1], [0], [0], [1], [0, 0, 1, 1], [], []>} : vector<64x256xbf16>, vector<256x128xbf16>, vector<64x128xf32> -> vector<64x128xf32>
    %c0_46 = arith.constant 0 : index
    %c0_47 = arith.constant 0 : index
    %114 = vector.load %arg8[%c0_46, %c0_47] : memref<1x128xf32, #tpu.memory_space<vmem>>, vector<1x128xf32>
    %115 = vector.broadcast %114 : vector<1x128xf32> to vector<64x128xf32>
    %116 = arith.addf %113, %115 : vector<64x128xf32>
    %117 = vector.shape_cast %116 : vector<64x128xf32> to vector<1x64x128xf32>
    %cst_48 = arith.constant dense<0.000000e+00> : vector<1xf32>
    %118 = vector.multi_reduction <add>, %117, %cst_48 [1, 2] : vector<1x64x128xf32> to vector<1xf32>
    %119 = vector.shape_cast %118 : vector<1xf32> to vector<1x1x1xf32>
    %120 = vector.extract %119[0, 0, 0] : f32 from vector<1x1x1xf32>
    %121 = vector.broadcast %120 : f32 to vector<1x1xf32>
    %122 = arith.mulf %116, %116 : vector<64x128xf32>
    %123 = vector.shape_cast %122 : vector<64x128xf32> to vector<1x64x128xf32>
    %cst_49 = arith.constant dense<0.000000e+00> : vector<1xf32>
    %124 = vector.multi_reduction <add>, %123, %cst_49 [1, 2] : vector<1x64x128xf32> to vector<1xf32>
    %125 = vector.shape_cast %124 : vector<1xf32> to vector<1x1x1xf32>
    %126 = vector.extract %125[0, 0, 0] : f32 from vector<1x1x1xf32>
    %127 = vector.broadcast %126 : f32 to vector<1x1xf32>
    %cst_50 = arith.constant 9.765625E-4 : f32
    %128 = vector.broadcast %cst_50 : f32 to vector<1x1xf32>
    %129 = arith.mulf %121, %128 : vector<1x1xf32>
    %cst_51 = arith.constant 9.765625E-4 : f32
    %130 = vector.broadcast %cst_51 : f32 to vector<1x1xf32>
    %131 = arith.mulf %127, %130 : vector<1x1xf32>
    %132 = arith.mulf %129, %129 : vector<1x1xf32>
    %133 = arith.subf %131, %132 : vector<1x1xf32>
    %cst_52 = arith.constant 0.000000e+00 : f32
    %134 = vector.broadcast %cst_52 : f32 to vector<1x1xf32>
    %135 = arith.maximumf %133, %134 : vector<1x1xf32>
    %136 = math.sqrt %135 : vector<1x1xf32>
    %cst_53 = arith.constant 9.99999974E-6 : f32
    %137 = vector.broadcast %cst_53 : f32 to vector<1x1xf32>
    %138 = arith.addf %136, %137 : vector<1x1xf32>
    %139 = tpu.reciprocal %138 {approx = true} : vector<1x1xf32> -> vector<1x1xf32>
    %140 = vector.broadcast %129 : vector<1x1xf32> to vector<64x128xf32>
    %141 = arith.subf %116, %140 : vector<64x128xf32>
    %142 = vector.broadcast %139 : vector<1x1xf32> to vector<64x128xf32>
    %143 = arith.mulf %141, %142 : vector<64x128xf32>
    %c0_54 = arith.constant 0 : index
    %c0_55 = arith.constant 0 : index
    %144 = vector.load %arg14[%c0_54, %c0_55] : memref<1x128xf32, #tpu.memory_space<vmem>>, vector<1x128xf32>
    %145 = vector.broadcast %144 : vector<1x128xf32> to vector<64x128xf32>
    %146 = arith.mulf %143, %145 : vector<64x128xf32>
    %c0_56 = arith.constant 0 : index
    %c0_57 = arith.constant 0 : index
    %147 = vector.load %arg15[%c0_56, %c0_57] : memref<1x128xf32, #tpu.memory_space<vmem>>, vector<1x128xf32>
    %148 = vector.broadcast %147 : vector<1x128xf32> to vector<64x128xf32>
    %149 = arith.addf %146, %148 : vector<64x128xf32>
    %cst_58 = arith.constant 0.000000e+00 : f32
    %150 = vector.broadcast %cst_58 : f32 to vector<64x128xf32>
    %151 = arith.cmpf oge, %149, %150 : vector<64x128xf32>
    %152 = vector.broadcast %7 : f32 to vector<64x128xf32>
    %153 = arith.mulf %152, %149 : vector<64x128xf32>
    %154 = arith.select %151, %149, %153 : vector<64x128xi1>, vector<64x128xf32>
    %c0_59 = arith.constant 0 : index
    %c0_60 = arith.constant 0 : index
    %c0_61 = arith.constant 0 : index
    %155 = vector.load %arg17[%c0_59, %c0_60, %c0_61] : memref<1x64x128xf32, #tpu.memory_space<vmem>>, vector<1x64x128xf32>
    %156 = vector.shape_cast %155 : vector<1x64x128xf32> to vector<64x128xf32>
    %157 = vector.shape_cast %154 : vector<64x128xf32> to vector<1x64x128xf32>
    tpu.vector_store %arg17[%c0_59, %c0_60, %c0_61], %157 {strides = array<i32>} : memref<1x64x128xf32, #tpu.memory_space<vmem>>, vector<1x64x128xf32>,
    return
  }
  func.func @transform_0(%arg0: i32) -> (i32, i32, i32) {
    %c0_i32 = arith.constant 0 : i32
    %c0_i32_0 = arith.constant 0 : i32
    %c0_i32_1 = arith.constant 0 : i32
    return %arg0, %c0_i32, %c0_i32_0 : i32, i32, i32
  }
  func.func @transform_1(%arg0: i32) -> (i32, i32, i32) {
    %c0_i32 = arith.constant 0 : i32
    %c0_i32_0 = arith.constant 0 : i32
    %c0_i32_1 = arith.constant 0 : i32
    return %arg0, %c0_i32, %c0_i32_0 : i32, i32, i32
  }
  func.func @transform_2(%arg0: i32) -> (i32, i32) {
    %c0_i32 = arith.constant 0 : i32
    %c0_i32_0 = arith.constant 0 : i32
    %c0_i32_1 = arith.constant 0 : i32
    return %c0_i32, %c0_i32_0 : i32, i32
  }
  func.func @transform_3(%arg0: i32) -> (i32, i32) {
    %c0_i32 = arith.constant 0 : i32
    %c0_i32_0 = arith.constant 0 : i32
    %c0_i32_1 = arith.constant 0 : i32
    return %c0_i32, %c0_i32_0 : i32, i32
  }
  func.func @transform_4(%arg0: i32) -> (i32, i32) {
    %c0_i32 = arith.constant 0 : i32
    %c0_i32_0 = arith.constant 0 : i32
    %c0_i32_1 = arith.constant 0 : i32
    return %c0_i32, %c0_i32_0 : i32, i32
  }
  func.func @transform_5(%arg0: i32) -> (i32, i32) {
    %c0_i32 = arith.constant 0 : i32
    %c0_i32_0 = arith.constant 0 : i32
    %c0_i32_1 = arith.constant 0 : i32
    return %c0_i32, %c0_i32_0 : i32, i32
  }
  func.func @transform_6(%arg0: i32) -> (i32, i32) {
    %c0_i32 = arith.constant 0 : i32
    %c0_i32_0 = arith.constant 0 : i32
    %c0_i32_1 = arith.constant 0 : i32
    return %c0_i32, %c0_i32_0 : i32, i32
  }
  func.func @transform_7(%arg0: i32) -> (i32, i32) {
    %c0_i32 = arith.constant 0 : i32
    %c0_i32_0 = arith.constant 0 : i32
    %c0_i32_1 = arith.constant 0 : i32
    return %c0_i32, %c0_i32_0 : i32, i32
  }
  func.func @transform_8(%arg0: i32) -> (i32, i32) {
    %c0_i32 = arith.constant 0 : i32
    %c0_i32_0 = arith.constant 0 : i32
    %c0_i32_1 = arith.constant 0 : i32
    return %c0_i32, %c0_i32_0 : i32, i32
  }
  func.func @transform_9(%arg0: i32) -> (i32, i32) {
    %c0_i32 = arith.constant 0 : i32
    %c0_i32_0 = arith.constant 0 : i32
    %c0_i32_1 = arith.constant 0 : i32
    return %c0_i32, %c0_i32_0 : i32, i32
  }
  func.func @transform_10(%arg0: i32) -> (i32, i32) {
    %c0_i32 = arith.constant 0 : i32
    %c0_i32_0 = arith.constant 0 : i32
    %c0_i32_1 = arith.constant 0 : i32
    return %c0_i32, %c0_i32_0 : i32, i32
  }
  func.func @transform_11(%arg0: i32) -> (i32, i32) {
    %c0_i32 = arith.constant 0 : i32
    %c0_i32_0 = arith.constant 0 : i32
    %c0_i32_1 = arith.constant 0 : i32
    return %c0_i32, %c0_i32_0 : i32, i32
  }
  func.func @transform_12(%arg0: i32) -> (i32, i32) {
    %c0_i32 = arith.constant 0 : i32
    %c0_i32_0 = arith.constant 0 : i32
    %c0_i32_1 = arith.constant 0 : i32
    return %c0_i32, %c0_i32_0 : i32, i32
  }
  func.func @transform_13(%arg0: i32) -> (i32, i32) {
    %c0_i32 = arith.constant 0 : i32
    %c0_i32_0 = arith.constant 0 : i32
    %c0_i32_1 = arith.constant 0 : i32
    return %c0_i32, %c0_i32_0 : i32, i32
  }
  func.func @transform_14(%arg0: i32) -> (i32, i32) {
    %c0_i32 = arith.constant 0 : i32
    %c0_i32_0 = arith.constant 0 : i32
    %c0_i32_1 = arith.constant 0 : i32
    return %c0_i32, %c0_i32_0 : i32, i32
  }
  func.func @transform_15(%arg0: i32) -> i32 {
    %c0_i32 = arith.constant 0 : i32
    %c0_i32_0 = arith.constant 0 : i32
    return %c0_i32 : i32
  }
  func.func @transform_16(%arg0: i32) -> (i32, i32, i32) {
    %c0_i32 = arith.constant 0 : i32
    %c0_i32_0 = arith.constant 0 : i32
    %c0_i32_1 = arith.constant 0 : i32
    return %arg0, %c0_i32, %c0_i32_0 : i32, i32, i32
  }
}

</mosaic_0001>

<bundles_post_ra>
// kernel: tpu_custom_call.1
= control target key start
LH: loop header
LB: loop body
LE: loop exit
PB: predicated region body
PF: predicated region fallthrough
CT: control target
= control target key end

     0   :  { %s3748_s0 = inlined_call_operand.hbm [shape: bf16[2,64,64], index: 0, kind: input, shape index: {}]   ;;  %s3749_s1 = inlined_call_operand.hbm [shape: f32[2,64,128], index: 1, kind: input, shape index: {}]   ;;  %s3750_s2 = inlined_call_operand.hbm [shape: bf16[256,128], index: 2, kind: input, shape index: {}]   ;;  %s3751_s3 = inlined_call_operand.vmem [shape: f32[1,128], index: 3, kind: input, shape index: {}]   ;;  %s3752_s4 = inlined_call_operand.hbm [shape: bf16[256,128], index: 4, kind: input, shape index: {}]   ;;  %s3753_s5 = inlined_call_operand.vmem [shape: f32[1,128], index: 5, kind: input, shape index: {}]   ;;  %s3754_s6 = inlined_call_operand.hbm [shape: bf16[256,128], index: 6, kind: input, shape index: {}]   ;;  %s3755_s7 = inlined_call_operand.vmem [shape: f32[1,128], index: 7, kind: input, shape index: {}]   ;;  %s3756_s8 = inlined_call_operand.hbm [shape: bf16[128,256], index: 8, kind: input, shape index: {}]   ;;  %s3757_s9 = inlined_call_operand.vmem [shape: f32[1,128], index: 9, kind: input, shape index: {}]   ;;  %s3758_s10 = inlined_call_operand.vmem [shape: f32[1,128], index: 10, kind: input, shape index: {}]   ;;  %s3759_s11 = inlined_call_operand.vmem [shape: f32[1,128], index: 11, kind: input, shape index: {}]   ;;  %s3760_s12 = inlined_call_operand.vmem [shape: f32[1,128], index: 12, kind: input, shape index: {}]   ;;  %s3761_s13 = inlined_call_operand.vmem [shape: f32[1,128], index: 13, kind: input, shape index: {}]   ;;  %s3762_s14 = inlined_call_operand.vmem [shape: f32[1,128], index: 14, kind: input, shape index: {}]   ;;  %s3763_s15 = inlined_call_operand.vmem [shape: f32[3], index: 15, kind: input, shape index: {}]   ;;  %s3764_s16 = inlined_call_operand.hbm [shape: f32[2,64,128], index: 16, kind: output, shape index: {}]  }
   0x1   :  { %3778 = sst [smem:[#allocation29_spill]] %s3748_s0 }
   0x2   :  { %3779 = sst [smem:[#allocation30_spill]] %s3750_s2 }
   0x3   :  { %3780 = sst [smem:[#allocation31_spill]] %s3752_s4 }
   0x4   :  { %3781 = sst [smem:[#allocation32_spill]] %s3754_s6 }
   0x5   :  { %3782 = sst [smem:[#allocation33_spill]] %s3755_s7 }
   0x6   :  { %3783 = sst [smem:[#allocation34_spill]] %s3756_s8 }
   0x7   :  { %3784 = sst [smem:[#allocation35_spill]] %s3761_s13 }
   0x8   :  { %3785 = sst [smem:[#allocation36_spill]] %s3762_s14 }
   0x9   :  { %3786 = sst [smem:[#allocation37_spill]] %s3763_s15 }
   0xa   :  { %3787 = sst [smem:[#allocation38_spill]] %s3764_s16 }
   0xb   :  { %21 = vsyncpa [#allocation3], 0 }
   0xc   :  { %23 = vsyncpa [#allocation3 + $0x1], 0 }
   0xd   :  { %24 = vsyncpa [#allocation7], 0 }
   0xe   :  { %26 = vsyncpa [#allocation7 + $0x1], 0 }
   0xf   :  { %27 = vsyncpa [#allocation10], 0 }
  0x10   :  { %28 = vsyncpa [#allocation13], 0 }
  0x11   :  { %29 = vsyncpa [#allocation5], 0 }
  0x12   :  { %30 = vsyncpa [#allocation4], 0 }
  0x13   :  { %32 = vsyncpa [#allocation4 + $0x1], 0  ;;  %s3213_s21 = smov 0   ;;  %s3215_s22 = smov 0  }
  0x14   :  { %s3217_s23 = smov 0   ;;  %s3219_s24 = smov 0  }
  0x15 LB: > { %3788 = sst [smem:[#allocation23_spill]] %s3103_s21  ;;  %s3237_s28 = sadd.s32 4294967295, %s3115_s24   ;;  %s3115_s24 = sphi %s3219_s24, %s3819_s24   ;;  %s3111_s23 = sphi %s3217_s23, %s3821_s23   ;;  %s3107_s22 = sphi %s3215_s22, %s3823_s22   ;;  %s3103_s21 = sphi %s3213_s21, %s3822_s21  }
  0x16   : > { %3789 = sst [smem:[#allocation24_spill]] %s3111_s23  ;;  %p2293_p0 = scmp.ge.s32.totalorder %s3115_s24, 1 }
  0x17   : > { %s3790_s2 = sld [smem:[#allocation30_spill]]  ;;  %p59_p1 = scmp.eq.s32.totalorder %s3237_s28, 0 }
  0x18   : > { %p415_p2 = scmp.lt.s32.totalorder %s3115_s24, 3  ;;  %s3117_s30 = smov [#allocation8]  }
  0x19   : > { %s428_s0 = sshll.u32 %s3117_s30, 4  ;;  %s3792_s4 = sld [smem:[#allocation31_spill]]  ;;  %s429_s0 = int_to_ptr.vmem [resolvable:$true] %s428_s0 }
  0x1a   : > { %p3242_p3 = pnand %p2293_p0, %p415_p2  ;;  %s3794_s6 = sld [smem:[#allocation32_spill]] }
  0x1b   : > { %s3767_s14 = smov 64   ;;  %s3768_s13 = smov 4  }
  0x1c   : > { %p2727_p4 = pneg %p3242_p3  ;;  %s3795_s8 = sld [smem:[#allocation34_spill]] }
  0x1d   : > { %s426_s27 = sshll.u32 %s3790_s2, 4  ;;  %s3118_s2 = smov [#allocation9]   ;;  %s427_s27 = int_to_ptr.hbm [resolvable:$true] %s426_s27 }
  0x1e   : > { %p3254_p6 = pnand %p2727_p4, %p59_p1  ;;  %s445_s16 = sshll.u32 %s3118_s2, 4  ;;  %s446_s16 = int_to_ptr.vmem [resolvable:$true] %s445_s16 }
  0x1f   : > { %s443_s19 = sshll.u32 %s3792_s4, 4  ;;  %s3121_s25 = smov [#allocation11]   ;;  %s444_s19 = int_to_ptr.hbm [resolvable:$true] %s443_s19 }
  0x20   : > { %s460_s30 = sshll.u32 %s3794_s6, 4  ;;  %s462_s26 = sshll.u32 %s3121_s25, 4  ;;  %s461_s30 = int_to_ptr.hbm [resolvable:$true] %s460_s30  ;;  %s463_s26 = int_to_ptr.vmem [resolvable:$true] %s462_s26 }
  0x21   : > { %2730 = dma.hbm_to_vmem [thread:$0]  (!%p3254_p6), %s427_s27, 2048, %s429_s0, [#allocation7], %s3767_s14, %s3767_s14, %s3768_s13  }
  0x22   : > { %2733 = dma.hbm_to_vmem [thread:$0]  (!%p3254_p6), %s444_s19, 2048, %s446_s16, [#allocation10], %s3767_s14, %s3767_s14, %s3768_s13  }
  0x23   : > { %s477_s2 = sshll.u32 %s3795_s8, 4  ;;  %s3122_s16 = smov [#allocation12]   ;;  %s478_s2 = int_to_ptr.hbm [resolvable:$true] %s477_s2 }
  0x24   : > { %2736 = dma.hbm_to_vmem [thread:$0]  (!%p3254_p6), %s461_s30, 2048, %s463_s26, [#allocation10], %s3767_s14, %s3767_s14, %s3768_s13  }
  0x25   : > { %s479_s27 = sshll.u32 %s3122_s16, 4  ;;  %s3769_s0 = smov 128   ;;  %s480_s27 = int_to_ptr.vmem [resolvable:$true] %s479_s27 }
  0x26   : > { %s3770_s19 = smov 8   ;;  %s3796_s15 = sld [smem:[#allocation37_spill]] }
  0x27   : > { %2739 = dma.hbm_to_vmem [thread:$0]  (!%p3254_p6), %s478_s2, 2048, %s480_s27, [#allocation13], %s3769_s0, %s3769_s0, %s3770_s19  }
  0x28   : > { %s3125_s25 = smov [#allocation14]   ;;  %s2292_s26 = sadd.s32 4294967294, %s3115_s24  }
  0x29   : > { %s3291_s16 = sadd.s32 1, %s3115_s24   ;;  %s45_s14 = sadd.s32 1, %s3111_s23 }
  0x2a   : > { %3797 = sst [smem:[#allocation25_spill]] %s3291_s16  ;;  %s42_s13 = ssub.s32 %s3115_s24, %s3291_s16 }
  0x2b   : > { %p52_p7 = scmp.ne.s32.totalorder %s3111_s23, %s3107_s22  ;;  %p43_p8 = scmp.eq.s32.totalorder %s42_s13, 0 }
  0x2c   : > { %s510_s30 = sshll.u32 %s3796_s15, 4  ;;  %p53_p9 = scmp.eq.s32.totalorder %s3115_s24, 0  ;;  %s511_s30 = int_to_ptr.vmem [resolvable:$true] %s510_s30 }
  0x2d   : > { %2742 = dma.vmem_to_smem (!%p3254_p6), %s511_s30, 16, %s3125_s25, [#allocation5]  }
  0x2e   : > { %p58_p10 = scmp.ne.s32.totalorder %s3107_s22, %s3103_s21  ;;  %p402_p11 = scmp.eq.s32.totalorder %s3237_s28, 1 }
  0x2f   : > { %s3303_s2 = scalar_select %p43_p8, %s3111_s23, %s45_s14  }
  0x30   : > { %p3305_p12 = por %p53_p9, %p52_p7  ;;  %p3311_p13 = por %p59_p1, %p58_p10 }
  0x31   : > { %3798 = sst [smem:[#allocation26_spill]] %s3303_s2  ;;  %p3315_p0 = por %p402_p11, %p52_p7 }
  0x32   : > { %p408_p2 = scmp.eq.s32.totalorder %s2292_s26, 1  ;;  %p2759_p4 = scmp.lt.s32.totalorder %s3115_s24, 2 }
  0x33   : > { %s3801_s17 = scalar_select %p3315_p0, 1, 0 }
  0x34   : > { %s3321_s13 = sand.u32 1, %s3111_s23   ;;  %p3323_p6 = por %p408_p2, %p58_p10 }
  0x35   : > { %3802 = sst [smem:[#allocation27_spill]] %s3801_s17  ;;  %s2300_s18 = sshll.u32 %s3321_s13, 5 }
  0x36   : > { %s3803_s14 = scalar_select %p3323_p6, 1, 0 }
  0x37   : > { %s2606_s30 = sshll.u32 %s3115_s24, 5  ;;  %s3805_s19 = sld [smem:[#allocation29_spill]] }
  0x38   : > { %3804 = sst [smem:[#allocation28_spill]] %s3803_s14  ;;  %s525_s8 = scalar_lea.vmem [#allocation2], %s2300_s18 }
  0x39   : > { %s533_s15 = sshll.u32 %s525_s8, 4  ;;  %p3334_p7 = pnand %p2759_p4, %p3305_p12  ;;  %s534_s15 = int_to_ptr.vmem [resolvable:$true] %s533_s15 }
  0x3a   : > { %s543_s2 = sand.u32 1, %s3115_s24   ;;  %s2303_s23 = sshll.u32 %s3321_s13, 6 }
  0x3b   : > { %s522_s16 = scalar_lea.sflag [#allocation3], %s3321_s13  ;;  %p2973_p9 = pneg %p3334_p7 }
  0x3d   : > { %s530_s4 = scalar_lea.hbm %s3805_s19, %s2606_s30  ;;  %s2976_s0 = scalar_lea.hbm %s3805_s19, 64 }
  0x3e   : > { %s531_s6 = sshll.u32 %s530_s4, 4  ;;  %s532_s6 = int_to_ptr.hbm [resolvable:$true] %s531_s6 }
  0x3f   : > { %s2969_s14 = sshra.s32 %s532_s6, 4  ;;  %s2970_s14 = int_to_ptr.hbm [resolvable:$true] %s2969_s14 }
  0x40   : > { %s2971_s21 = scalar_lea.hbm %s2970_s14, 32  ;;  %p2977_p12 = scmp.lt.s32.totalorder %s2970_s14, %s3805_s19 }
  0x41   : > { %p2972_p8 = scmp.ne.s32.totalorder %s2970_s14, %s2971_s21  ;;  %p2978_p2 = scmp.lt.s32.totalorder %s2976_s0, %s2971_s21 }
  0x43   : > { %p2974_p10 = pnand %p2973_p9, %p2972_p8  ;;  %p2979_p4 = por %p2978_p2, %p2977_p12 }
  0x45   : > { %p2975_p11 = pneg %p2974_p10 }
  0x47   : > { %p2980_p5 = pnand %p2979_p4, %p2975_p11 }
  0x49   : > { %2983 = shalt.err (!%p2980_p5)
}
  0x4a   : > { %s3807_s13 = smov 4   ;;  %s3808_s30 = smov 64  }
  0x4b   : > { %2746 = dma.hbm_to_vmem [thread:$0]  (!%p3334_p7), %s532_s6, 512, %s534_s15, %s522_s16, %s3808_s30, %s3808_s30, %s3807_s13  }
  0x4c   : > { %s2607_s25 = sshll.u32 %s3115_s24, 6  ;;  %s547_s17 = scalar_lea.vmem [#allocation6], %s2303_s23 }
  0x4d   : > { %s555_s4 = sshll.u32 %s547_s17, 4  ;;  %s552_s27 = scalar_lea.hbm %s3749_s1, %s2607_s25  ;;  %s556_s4 = int_to_ptr.vmem [resolvable:$true] %s555_s4 }
  0x4e   : > { %s553_s21 = sshll.u32 %s552_s27, 4  ;;  %s544_s14 = scalar_lea.sflag [#allocation7], %s543_s2  ;;  %s554_s21 = int_to_ptr.hbm [resolvable:$true] %s553_s21 }
  0x4f   : > { %s2999_s0 = sshra.s32 %s554_s21, 4  ;;  %s3006_s23 = scalar_lea.hbm %s3749_s1, 128  ;;  %s3000_s0 = int_to_ptr.hbm [resolvable:$true] %s2999_s0 }
  0x50   : > { %s3001_s18 = scalar_lea.hbm %s3000_s0, 64  ;;  %p3007_p11 = scmp.lt.s32.totalorder %s3000_s0, %s3749_s1 }
  0x51   : > { %p3002_p5 = scmp.ne.s32.totalorder %s3000_s0, %s3001_s18  ;;  %p3008_p12 = scmp.lt.s32.totalorder %s3006_s23, %s3001_s18 }
  0x53   : > { %p3004_p8 = pnand %p3002_p5, %p2973_p9  ;;  %p3009_p2 = por %p3008_p12, %p3007_p11 }
  0x55   : > { %p3005_p10 = pneg %p3004_p8 }
  0x57   : > { %p3010_p4 = pnand %p3009_p2, %p3005_p10 }
  0x59   : > { %3013 = shalt.err (!%p3010_p4)
}
  0x5a   : > { %s3809_s7 = smov 8   ;;  %s3810_s2 = smov 128  }
  0x5b   : > { %2749 = dma.hbm_to_vmem [thread:$0]  (!%p3334_p7), %s554_s21, 1024, %s556_s4, %s544_s14, %s3810_s2, %s3810_s2, %s3809_s7  }
  0x5c   : > { %567 = sbr.rel (%p3242_p3) target bundleno = 1911 (0x777), region = 84  ;;  %s3378_s13 = sand.u32 (!%p3242_p3), 1, %s3107_s22  }
  0x5d   : > { %s2307_s30 = sshll.u32 (!%p3242_p3), %s3378_s13, 5  ;;  %s570_s25 = scalar_lea.sflag (!%p3242_p3), [#allocation3], %s3378_s13 }
  0x5e   : > { %s3382_s8 = scalar_lea.vmem (!%p3242_p3), [#allocation2], %s2307_s30 }
  0x61   : > { %3074 = dma.done.wait (%p3311_p13), %s570_s25, 512  }
  0x62   : > { %3076 = vsyncadd (%p3311_p13), %s570_s25, 4294966784  ;;  %s579_s29 = sand.u32 1, %s3237_s28   ;;  %s2308_s26 = sshll.u32 %s3378_s13, 6 }
  0x63   : > { %s580_s4 = scalar_lea.sflag [#allocation7], %s579_s29  ;;  %s583_s27 = scalar_lea.vmem [#allocation6], %s2308_s26 }
  0x64   : > { %3078 = dma.done.wait (%p3311_p13), %s580_s4, 1024  }
  0x65   : > { %3080 = vsyncadd (%p3311_p13), %s580_s4, 4294966272 }
  0x66   : > { %3082 = dma.done.wait (%p59_p1), [#allocation7], 2048  }
  0x67   : > { %3084 = vsyncadd (%p59_p1), [#allocation7], 4294965248 }
  0x68   : > { %3086 = dma.done.wait (%p59_p1), [#allocation10], 4096  }
  0x69   : > { %3088 = vsyncadd (%p59_p1), [#allocation10], 4294963200 }
  0x6a   : > { %3090 = dma.done.wait (%p59_p1), [#allocation13], 2048  }
  0x6b   : > { %3092 = vsyncadd (%p59_p1), [#allocation13], 4294965248 }
  0x6c   : > { %3094 = dma.done.wait (%p59_p1), [#allocation5], 16  }
  0x6d   : > { %3096 = vsyncadd (%p59_p1), [#allocation5], 4294967280 }
  0x6e   : > { %614 = sfence }
  0x6f   : > { %v679_v0 = vld [vmem:[%s583_s27 + $0x30] sm:$0xff]  ;;  %v680_v1 = vld [vmem:[%s583_s27 + $0x38] sm:$0xff]  ;;  %v677_v2 = vld [vmem:[%s583_s27 + $0x20] sm:$0xff]  ;;  %vm736_vm0 = vcmask 523264   ;;  %s689_s18 = sld [smem:[#allocation14]] }
  0x70   : > { %v687_v3 = vpack.c.bf16 %v679_v0, %v679_v0  ;;  %v688_v4 = vpack.c.bf16 %v680_v1, %v680_v1  ;;  %v678_v5 = vld [vmem:[%s583_s27 + $0x28] sm:$0xff]  ;;  %v685_v6 = vpack.c.bf16 %v677_v2, %v677_v2  ;;  %v675_v7 = vld [vmem:[%s583_s27 + $0x10] sm:$0xff]  ;;  %v676_v8 = vld [vmem:[%s583_s27 + $0x18] sm:$0xff]  ;;  %s2315_s25 = sld [smem:[#allocation14 + $0x1]] }
  0x71   : > { %v686_v9 = vpack.c.bf16 %v678_v5, %v678_v5  ;;  %v683_v10 = vpack.c.bf16 %v675_v7, %v675_v7  ;;  %v673_v11 = vld [vmem:[%s583_s27] sm:$0xff]  ;;  %v684_v15 = vpack.c.bf16 %v676_v8, %v676_v8  ;;  %v674_v16 = vld [vmem:[%s583_s27 + $0x8] sm:$0xff]  ;;  %v2619_v30 = vld [vmem:[#allocation8 + $0x38] sm:$0xff]  ;;  %s3694_s6 = sld [smem:[#allocation14 + $0x2]] }
  0x72   : > { %v726_v12 = vunpack.c.l.b16 %v687_v3  ;;  %v727_v13 = vunpack.c.l.b16 %v688_v4  ;;  %v724_v14 = vunpack.c.l.b16 %v685_v6  ;;  %v681_v19 = vpack.c.bf16 %v673_v11, %v673_v11  ;;  %v3424_v28 = vld [vmem:[%s3382_s8] sm:$0xff]  ;;  %v3430_v29 = vld [vmem:[%s3382_s8 + $0x8] sm:$0xff]  ;;  %v2627_v31 = vld [vmem:[#allocation8 + $0x78] sm:$0xff]  ;;  %942 = vmatpush.bf16.msra.mxu1 %v2619_v30  ;;  %s3812_s16 = sld [smem:[#allocation35_spill]] }
  0x73   : > { %v725_v17 = vunpack.c.l.b16 %v686_v9  ;;  %v722_v21 = vunpack.c.l.b16 %v683_v10  ;;  %v723_v22 = vunpack.c.l.b16 %v684_v15  ;;  %v682_v23 = vpack.c.bf16 %v674_v16, %v674_v16  ;;  %v2618_v32 = vld [vmem:[#allocation8 + $0x30] sm:$0xff]  ;;  %2677 = vmatpush.bf16.msra.mxu2 %v2627_v31  ;;  %v2617_v33 = vld [vmem:[#allocation8 + $0x28] sm:$0xff]  ;;  %v2616_v34 = vld [vmem:[#allocation8 + $0x20] sm:$0xff]  ;;  %s3814_s4 = sld [smem:[#allocation38_spill]] }
  0x74   : > { %v3412_v18 = vpack.c.b16 %v727_v13, %v726_v12  ;;  %v720_v25 = vunpack.c.l.b16 %v681_v19  ;;  %v3435_v35 = vld [vmem:[%s3382_s8 + $0x10] sm:$0xff]  ;;  %v3440_v36 = vld [vmem:[%s3382_s8 + $0x18] sm:$0xff]  ;;  %v2625_v40 = vld [vmem:[#allocation8 + $0x68] sm:$0xff] }
  0x75   : > { %v3415_v20 = vpack.c.b16 %v725_v17, %v724_v14  ;;  %v3418_v24 = vpack.c.b16 %v723_v22, %v722_v21  ;;  %v721_v26 = vunpack.c.l.b16 %v682_v23  ;;  %v2615_v37 = vld [vmem:[#allocation8 + $0x18] sm:$0xff]  ;;  %v2626_v38 = vld [vmem:[#allocation8 + $0x70] sm:$0xff]  ;;  %v2613_v41 = vld [vmem:[#allocation8 + $0x8] sm:$0xff] }
  0x76   : > { %753 = vmatpush.bf16.msra.mxu0 %v3412_v18  ;;  %943 = vmatpush.bf16.msra.mxu1 %v2618_v32  ;;  %v2614_v39 = vld [vmem:[#allocation8 + $0x10] sm:$0xff]  ;;  %v2624_v42 = vld [vmem:[#allocation8 + $0x60] sm:$0xff]  ;;  %v2623_v44 = vld [vmem:[#allocation8 + $0x58] sm:$0xff] }
  0x77   : > { %v3421_v27 = vpack.c.b16 %v721_v26, %v720_v25  ;;  %2678 = vmatpush.bf16.msra.mxu2 %v2626_v38  ;;  %v2612_v43 = vld [vmem:[#allocation8] sm:$0xff]  ;;  %v2622_v45 = vld [vmem:[#allocation8 + $0x50] sm:$0xff]  ;;  %v2621_v46 = vld [vmem:[#allocation8 + $0x48] sm:$0xff] }
  0x78   : > { %v2620_v47 = vld [vmem:[#allocation8 + $0x40] sm:$0xff]  ;;  %v2459_v26 = vld [vmem:[#allocation12 + $0x70] sm:$0xf]  ;;  %v2643_v30 = vld [vmem:[#allocation12 + $0x74] sm:$0xf0] }
  0x79   : > { %s3049_s15 = scalar_lea.hbm %s3814_s4, 128 }
  0x7a   : > { %754 = vmatpush.bf16.msra.mxu0 %v3415_v20  ;;  %944 = vmatpush.bf16.msra.mxu1 %v2617_v33  ;;  %v2451_v33 = vld [vmem:[#allocation12 + $0x60] sm:$0xf] }
  0x7b   : > { %2679 = vmatpush.bf16.msra.mxu2 %v2625_v40 }
  0x7e   : > { %755 = vmatpush.bf16.msra.mxu0 %v3418_v24  ;;  %945 = vmatpush.bf16.msra.mxu1 %v2616_v34  ;;  %v2641_v34 = vld [vmem:[#allocation12 + $0x64] sm:$0xf0] }
  0x7f   : > { %2680 = vmatpush.bf16.msra.mxu2 %v2624_v42 }
  0x82   : > { %756 = vmatpush.bf16.msra.mxu0 %v3421_v27  ;;  %946 = vmatpush.bf16.msra.mxu1 %v2615_v37 }
  0x83   : > { %2681 = vmatpush.bf16.msra.mxu2 %v2623_v44 }
  0x85   : > { %2333 = vmatmul.msk.bf16.vlgmr.msra.gmra.mxu0 %vm736_vm0, %v3424_v28 }
  0x86   : > { %947 = vmatpush.bf16.msra.mxu1 %v2614_v39  ;;  %v2809_v39 = vld [vmem:[%s3751_s3] ss:$0 sm:$0xff] }
  0x87   : > { %2682 = vmatpush.bf16.msra.mxu2 %v2622_v45 }
  0x8a   : > { %948 = vmatpush.bf16.msra.mxu1 %v2613_v41  ;;  %v2639_v41 = vld [vmem:[#allocation12 + $0x54] sm:$0xf0] }
  0x8b   : > { %2683 = vmatpush.bf16.msra.mxu2 %v2621_v46 }
  0x8e   : > { %949 = vmatpush.bf16.msra.mxu1 %v2612_v43  ;;  %v2435_v43 = vld [vmem:[#allocation12 + $0x40] sm:$0xf] }
  0x8f   : > { %2684 = vmatpush.bf16.msra.mxu2 %v2620_v47 }
  0x92   : > { %971 = vmatpush.bf16.msrb.mxu1 %v2627_v31  ;;  %984 = vmatmul.bf16.vlgmr.msra.gmra.mxu2 %v3418_v24  ;;  %v2460_v31 = vor.u32 %v2643_v30, %v2459_v26  ;;  %v2403_v30 = vld [vmem:[#allocation12] sm:$0xf] }
  0x94   : > { %1222 = vmatpush.bf16.msra.mxu3 %v2460_v31  ;;  %v2629_v31 = vld [vmem:[#allocation12 + $0x4] sm:$0xf0] }
  0x95   : > { %2334 = vmatmul.msk.bf16.gmra.mxu0 %vm736_vm0, %v3430_v29 }
  0x96   : > { %972 = vmatpush.bf16.msrb.mxu1 %v2626_v38  ;;  %v2452_v38 = vor.u32 %v2641_v34, %v2451_v33 }
  0x98   : > { %1223 = vmatpush.bf16.msra.mxu3 %v2452_v38 }
  0x9a   : > { %973 = vmatpush.bf16.msrb.mxu1 %v2625_v40  ;;  %v2443_v40 = vld [vmem:[#allocation12 + $0x50] sm:$0xf] }
  0x9e   : > { %974 = vmatpush.bf16.msrb.mxu1 %v2624_v42  ;;  %v2444_v42 = vor.u32 %v2639_v41, %v2443_v40 }
  0xa0   : > { %1224 = vmatpush.bf16.msra.mxu3 %v2444_v42 }
  0xa2   : > { %975 = vmatpush.bf16.msrb.mxu1 %v2623_v44  ;;  %989 = vmatmul.bf16.gmra.mxu2 %v3415_v20  ;;  %v2637_v44 = vld [vmem:[#allocation12 + $0x44] sm:$0xf0] }
  0xa5   : > { %2335 = vmatmul.msk.bf16.gmra.mxu0 %vm736_vm0, %v3435_v35 }
  0xa6   : > { %976 = vmatpush.bf16.msrb.mxu1 %v2622_v45 }
  0xaa   : > { %977 = vmatpush.bf16.msrb.mxu1 %v2621_v46 }
  0xae   : > { %978 = vmatpush.bf16.msrb.mxu1 %v2620_v47  ;;  %v2436_v47 = vor.u32 %v2637_v44, %v2435_v43 }
  0xb0   : > { %1225 = vmatpush.bf16.msra.mxu3 %v2436_v47 }
  0xb2   : > { %994 = vmatmul.bf16.gmra.mxu2 %v3412_v18 }
  0xb5   : > { %2336 = vmatmul.msk.bf16.gmra.mxu0 %vm736_vm0, %v3440_v36 }
 0x102   : > { %v758_v48 = vpop.f32.mrf.mxu0 }
 0x103   : > { %v778_v49 = vpack.c.bf16 %v758_v48, %v758_v48 }
 0x105   : > { %v794_v52 = vunpack.c.l.b16 %v778_v49 }
 0x10a   : > { %v760_v50 = vpop.f32.mrf.mxu0 }
 0x10b   : > { %v779_v51 = vpack.c.bf16 %v760_v50, %v760_v50 }
 0x10d   : > { %v795_v53 = vunpack.c.l.b16 %v779_v51  ;;  %v2427_v51 = vld [vmem:[#allocation12 + $0x30] sm:$0xf] }
 0x10f   : > { %v802_v54 = vpack.c.b16 %v795_v53, %v794_v52  ;;  %v2635_v52 = vld [vmem:[#allocation12 + $0x34] sm:$0xf0] }
 0x111   : > { %950 = vmatmul.bf16.vlgmr.msra.gmra.mxu1 %v802_v54 }
 0x112   : > { %v763_v55 = vpop.f32.mrf.mxu0 }
 0x113   : > { %v780_v56 = vpack.c.bf16 %v763_v55, %v763_v55 }
 0x115   : > { %v796_v59 = vunpack.c.l.b16 %v780_v56  ;;  %v985_v16 = vpop.f32.mrf.mxu2 }
 0x11a   : > { %v765_v57 = vpop.f32.mrf.mxu0 }
 0x11b   : > { %v781_v58 = vpack.c.bf16 %v765_v57, %v765_v57 }
 0x11d   : > { %v797_v60 = vunpack.c.l.b16 %v781_v58  ;;  %v987_v21 = vpop.f32.mrf.mxu2  ;;  %v2428_v58 = vor.u32 %v2635_v52, %v2427_v51 }
 0x11f   : > { %v803_v61 = vpack.c.b16 %v797_v60, %v796_v59  ;;  %1226 = vmatpush.bf16.msra.mxu3 %v2428_v58 }
 0x121   : > { %955 = vmatmul.bf16.gmra.mxu1 %v803_v61 }
 0x122   : > { %v768_v62 = vpop.f32.mrf.mxu0 }
 0x123   : > { %v782_v63 = vpack.c.bf16 %v768_v62, %v768_v62 }
 0x125   : > { %v798_v2 = vunpack.c.l.b16 %v782_v63  ;;  %v990_v23 = vpop.f32.mrf.mxu2  ;;  %v2419_v63 = vld [vmem:[#allocation12 + $0x20] sm:$0xf] }
 0x12a   : > { %v770_v0 = vpop.f32.mrf.mxu0 }
 0x12b   : > { %v783_v1 = vpack.c.bf16 %v770_v0, %v770_v0  ;;  %v2633_v0 = vld [vmem:[#allocation12 + $0x24] sm:$0xf0] }
 0x12d   : > { %v799_v3 = vunpack.c.l.b16 %v783_v1  ;;  %v992_v32 = vpop.f32.mrf.mxu2 }
 0x12f   : > { %v804_v4 = vpack.c.b16 %v799_v3, %v798_v2 }
 0x131   : > { %960 = vmatmul.bf16.gmra.mxu1 %v804_v4 }
 0x132   : > { %v773_v5 = vpop.f32.mrf.mxu0 }
 0x133   : > { %v784_v6 = vpack.c.bf16 %v773_v5, %v773_v5 }
 0x135   : > { %v800_v9 = vunpack.c.l.b16 %v784_v6  ;;  %v995_v54 = vpop.f32.mrf.mxu2  ;;  %v2420_v6 = vor.u32 %v2633_v0, %v2419_v63 }
 0x137   : > { %1227 = vmatpush.bf16.msra.mxu3 %v2420_v6 }
 0x13a   : > { %v775_v7 = vpop.f32.mrf.mxu0 }
 0x13b   : > { %v785_v8 = vpack.c.bf16 %v775_v7, %v775_v7 }
 0x13d   : > { %v801_v10 = vunpack.c.l.b16 %v785_v8 }
 0x13f   : > { %v805_v11 = vpack.c.b16 %v801_v10, %v800_v9 }
 0x141   : > { %965 = vmatmul.bf16.gmra.mxu1 %v805_v11  ;;  %v2411_v11 = vld [vmem:[#allocation12 + $0x10] sm:$0xf] }
 0x151   : > { %979 = vmatmul.bf16.vlgmr.msrb.gmra.mxu1 %v3421_v27 }
 0x18e   : > { %v951_v12 = vpop.f32.mrf.mxu1 }
 0x18f   : > { %v952_v45 = vadd.f32 %v2809_v39, %v951_v12  ;;  %v2631_v12 = vld [vmem:[#allocation12 + $0x14] sm:$0xf0] }
 0x196   : > { %v953_v13 = vpop.f32.mrf.mxu1 }
 0x197   : > { %v954_v48 = vadd.f32 %v2809_v39, %v953_v13 }
 0x19e   : > { %v956_v14 = vpop.f32.mrf.mxu1 }
 0x19f   : > { %v957_v46 = vadd.f32 %v2809_v39, %v956_v14 }
 0x1a1   : > { %v3453_v56 = vadd.f32 %v985_v16, %v957_v46 }
 0x1a3   : > { %v1019_v2 = vmul.f32 %v3453_v56, %v3453_v56 }
 0x1a6   : > { %v958_v15 = vpop.f32.mrf.mxu1 }
 0x1a7   : > { %v959_v49 = vadd.f32 %v2809_v39, %v958_v15 }
 0x1a9   : > { %v3457_v59 = vadd.f32 %v987_v21, %v959_v49  ;;  %v2412_v21 = vor.u32 %v2631_v12, %v2411_v11 }
 0x1ab   : > { %v1020_v7 = vmul.f32 %v3457_v59, %v3457_v59  ;;  %1228 = vmatpush.bf16.msra.mxu3 %v2412_v21 }
 0x1ae   : > { %v961_v17 = vpop.f32.mrf.mxu1 }
 0x1af   : > { %v962_v53 = vadd.f32 %v2809_v39, %v961_v17 }
 0x1b1   : > { %v3465_v1 = vadd.f32 %v990_v23, %v962_v53 }
 0x1b3   : > { %v1021_v13 = vmul.f32 %v3465_v1, %v3465_v1 }
 0x1b6   : > { %v963_v19 = vpop.f32.mrf.mxu1 }
 0x1b7   : > { %v964_v3 = vadd.f32 %v2809_v39, %v963_v19  ;;  %v997_v19 = vpop.f32.mrf.mxu2 }
 0x1b9   : > { %v3475_v14 = vadd.f32 %v992_v32, %v964_v3  ;;  %v2404_v32 = vor.u32 %v2629_v31, %v2403_v30 }
 0x1bb   : > { %v1022_v33 = vmul.f32 %v3475_v14, %v3475_v14  ;;  %1229 = vmatpush.bf16.msra.mxu3 %v2404_v32 }
 0x1be   : > { %v966_v22 = vpop.f32.mrf.mxu1  ;;  %1230 = vmatmul.bf16.vlgmr.msra.gmra.mxu3 %v3421_v27 }
 0x1bf   : > { %v967_v8 = vadd.f32 %v2809_v39, %v966_v22 }
 0x1c1   : > { %v3478_v23 = vadd.f32 %v995_v54, %v967_v8 }
 0x1c6   : > { %v968_v25 = vpop.f32.mrf.mxu1 }
 0x1c7   : > { %v969_v15 = vadd.f32 %v2809_v39, %v968_v25  ;;  %v1023_v39 = vmul.f32 %v3478_v23, %v3478_v23 }
 0x1c9   : > { %v3483_v34 = vadd.f32 %v997_v19, %v969_v15 }
 0x1cb   : > { %v1024_v41 = vmul.f32 %v3483_v34, %v3483_v34 }
 0x1ce   : > { %v980_v37 = vpop.f32.mrf.mxu1  ;;  %1235 = vmatmul.bf16.gmra.mxu3 %v3418_v24 }
 0x1cf   : > { %v3451_v50 = vadd.f32 %v980_v37, %v952_v45 }
 0x1d1   : > { %v1017_v60 = vmul.f32 %v3451_v50, %v3451_v50 }
 0x1d6   : > { %v982_v55 = vpop.f32.mrf.mxu1 }
 0x1d7   : > { %v3455_v57 = vadd.f32 %v982_v55, %v954_v48 }
 0x1d9   : > { %v1000_v61 = vadd.f32 %v3455_v57, %v3451_v50  ;;  %v1018_v62 = vmul.f32 %v3455_v57, %v3455_v57 }
 0x1db   : > { %v1001_v4 = vadd.f32 %v1000_v61, %v3453_v56  ;;  %v1025_v5 = vadd.f32 %v1018_v62, %v1017_v60 }
 0x1dd   : > { %v1026_v9 = vadd.f32 %v1025_v5, %v1019_v2  ;;  %v1002_v10 = vadd.f32 %v1001_v4, %v3457_v59 }
 0x1de   : > { %1240 = vmatmul.bf16.gmra.mxu3 %v3415_v20 }
 0x1df   : > { %v1003_v16 = vadd.f32 %v1002_v10, %v3465_v1  ;;  %v1027_v17 = vadd.f32 %v1026_v9, %v1020_v7 }
 0x1e1   : > { %v1004_v22 = vadd.f32 %v1003_v16, %v3475_v14  ;;  %v1028_v26 = vadd.f32 %v1027_v17, %v1021_v13 }
 0x1e3   : > { %v1005_v25 = vadd.f32 %v1004_v22, %v3478_v23  ;;  %v1029_v38 = vadd.f32 %v1028_v26, %v1022_v33 }
 0x1e5   : > { %v1006_v37 = vadd.f32 %v1005_v25, %v3483_v34  ;;  %v1030_v40 = vadd.f32 %v1029_v38, %v1023_v39  ;;  %v2810_v25 = vld [vmem:[%s3757_s9] ss:$0 sm:$0xff] }
 0x1e7   : > { %1007 = vadd.xlane.f32.xlu0 %v1006_v37  ;;  %v1031_v42 = vadd.f32 %v1030_v40, %v1024_v41 }
 0x1ee   : > { %1245 = vmatmul.bf16.gmra.mxu3 %v3412_v18 }
 0x1ef   : > { %1032 = vadd.xlane.f32.xlu0 %v1031_v42 }
 0x241   : > { %v3495_v61 = vpop.f32.mrf.mxu3 }
 0x249   : > { %v3497_v62 = vpop.f32.mrf.mxu3 }
 0x251   : > { %v3499_v2 = vpop.f32.mrf.mxu3 }
 0x259   : > { %v3501_v8 = vpop.f32.mrf.mxu3 }
 0x25a   : > { %v1008_v43 = vpop.xlane.xlu0 %1007 }
 0x25b   : > { %v1009_v44 = vrot.slane %v1008_v43, 4 }
 0x25d   : > { %v1010_v45 = vadd.f32 %v1009_v44, %v1008_v43 }
 0x25f   : > { %v1011_v46 = vrot.slane %v1010_v45, 2 }
 0x261   : > { %v1012_v47 = vadd.f32 %v1011_v46, %v1010_v45  ;;  %v3503_v15 = vpop.f32.mrf.mxu3 }
 0x262   : > { %v1033_v48 = vpop.xlane.xlu0 %1032 }
 0x263   : > { %v1034_v49 = vrot.slane %v1033_v48, 4  ;;  %v1013_v51 = vrot.slane %v1012_v47, 1 }
 0x265   : > { %v1035_v52 = vadd.f32 %v1034_v49, %v1033_v48  ;;  %v1014_v53 = vadd.f32 %v1013_v51, %v1012_v47  ;;  %v1109_v51 = vstv %s689_s18 }
 0x267   : > { %v1036_v54 = vrot.slane %v1035_v52, 2  ;;  %2689 = vpush %v1014_v53 }
 0x269   : > { %v1037_v55 = vadd.f32 %v1036_v54, %v1035_v52  ;;  %v1243_v30 = vpop.f32.mrf.mxu3 }
 0x26b   : > { %v1038_v58 = vrot.slane %v1037_v55, 1 }
 0x26d   : > { %v1039_v60 = vadd.f32 %v1038_v58, %v1037_v55 }
 0x26f   : > { %2691 = vpush %v1039_v60 }
 0x271   : > { %v1246_v52 = vpop.f32.mrf.mxu3 }
 0x298   : > { %s2690_s14 = spop %2689 }
 0x299   : > { %v1016_v63 = vstv %s2690_s14  ;;  %s3811_s14 = sld [smem:[#allocation33_spill]] }
 0x29a   : > { %v1042_v0 = vmul.f32 0.00048828125, %v1016_v63 }
 0x29c   : > { %v1044_v5 = vmul.f32 %v1042_v0, %v1042_v0  ;;  %v1063_v31 = vsub.f32 %v3453_v56, %v1042_v0  ;;  %v1064_v33 = vsub.f32 %v3457_v59, %v1042_v0  ;;  %v1065_v32 = vsub.f32 %v3465_v1, %v1042_v0  ;;  %v2811_v59 = vld [vmem:[%s3758_s10] ss:$0 sm:$0xff] }
 0x29d   : > { %v1066_v37 = vsub.f32 %v3475_v14, %v1042_v0  ;;  %v1067_v39 = vsub.f32 %v3478_v23, %v1042_v0  ;;  %v1068_v40 = vsub.f32 %v3483_v34, %v1042_v0  ;;  %v1061_v41 = vsub.f32 %v3451_v50, %v1042_v0 }
 0x29e   : > { %v1062_v42 = vsub.f32 %v3455_v57, %v1042_v0 }
 0x2a0   : > { %s2692_s0 = spop %2691 }
 0x2a1   : > { %v1041_v3 = vstv %s2692_s0 }
 0x2a2   : > { %v1043_v4 = vmul.f32 0.00048828125, %v1041_v3 }
 0x2a4   : > { %v1045_v6 = vsub.f32 %v1043_v4, %v1044_v5 }
 0x2a6   : > { %v1046_v7 = vmax.f32 %v1045_v6, 0.0 }
 0x2a8   : > { %2818 = vrsqrt.f32 %v1046_v7  ;;  %vm1054_vm1 = vcmp.eq.f32.partialorder %v1046_v7, inf  ;;  %v1057_v19 = vand.u32 2147483648, %v1046_v7  ;;  %vm1056_vm2 = vcmp.eq.f32.partialorder %v1046_v7, 0.0 }
 0x2ae   : > { %v2819_v9 = vpop.eup %2818 }
 0x2af   : > { %v1048_v10 = vmul.f32 %v2819_v9, %v1046_v7 }
 0x2b1   : > { %v1049_v11 = vmul.f32 %v2819_v9, %v1048_v10 }
 0x2b3   : > { %v1050_v12 = vmul.f32 0.5, %v1049_v11 }
 0x2b5   : > { %v1051_v13 = vsub.f32 1.5, %v1050_v12 }
 0x2b7   : > { %v1052_v16 = vmul.f32 %v2819_v9, %v1051_v13 }
 0x2b9   : > { %v1053_v17 = vmul.f32 %v1052_v16, %v1046_v7 }
 0x2bb   : > { %v1055_v21 = vsel %vm1054_vm1, %v1046_v7, %v1053_v17 }
 0x2bc   : > { %v1058_v22 = vsel %vm1056_vm2, %v1057_v19, %v1055_v21 }
 0x2bd   : > { %v1059_v26 = vadd.f32 1e-05, %v1058_v22 }
 0x2bf   : > { %2820 = vrcp.f32 %v1059_v26 }
 0x2c5   : > { %v2821_v38 = vpop.eup %2820 }
 0x2c6   : > { %v1071_v56 = vmul.f32 %v2821_v38, %v1063_v31  ;;  %v1072_v43 = vmul.f32 %v2821_v38, %v1064_v33  ;;  %v1073_v44 = vmul.f32 %v2821_v38, %v1065_v32  ;;  %v1074_v45 = vmul.f32 %v2821_v38, %v1066_v37  ;;  %v1248_v32 = vpop.f32.mrf.mxu3 }
 0x2c7   : > { %v1075_v1 = vmul.f32 %v2821_v38, %v1067_v39  ;;  %v1076_v46 = vmul.f32 %v2821_v38, %v1068_v40  ;;  %v1069_v14 = vmul.f32 %v2821_v38, %v1061_v41  ;;  %v1070_v47 = vmul.f32 %v2821_v38, %v1062_v42 }
 0x2c8   : > { %v1083_v48 = vmul.f32 %v2810_v25, %v1071_v56  ;;  %v1084_v23 = vmul.f32 %v2810_v25, %v1072_v43  ;;  %v1085_v49 = vmul.f32 %v2810_v25, %v1073_v44  ;;  %v1086_v34 = vmul.f32 %v2810_v25, %v1074_v45 }
 0x2c9   : > { %v1087_v50 = vmul.f32 %v2810_v25, %v1075_v1  ;;  %v1088_v57 = vmul.f32 %v2810_v25, %v1076_v46  ;;  %v1081_v0 = vmul.f32 %v2810_v25, %v1069_v14  ;;  %v1082_v3 = vmul.f32 %v2810_v25, %v1070_v47 }
 0x2ca   : > { %v1095_v53 = vadd.f32 %v2811_v59, %v1083_v48  ;;  %v1096_v54 = vadd.f32 %v2811_v59, %v1084_v23  ;;  %v1097_v55 = vadd.f32 %v2811_v59, %v1085_v49  ;;  %v1098_v58 = vadd.f32 %v2811_v59, %v1086_v34 }
 0x2cb   : > { %v1099_v60 = vadd.f32 %v2811_v59, %v1087_v50  ;;  %v1100_v63 = vadd.f32 %v2811_v59, %v1088_v57  ;;  %v1093_v13 = vadd.f32 %v2811_v59, %v1081_v0  ;;  %v1094_v16 = vadd.f32 %v2811_v59, %v1082_v3  ;;  %v2650_v0 = vld [vmem:[#allocation9 + $0x30] sm:$0xff]  ;;  %v2649_v3 = vld [vmem:[#allocation9 + $0x28] sm:$0xff] }
 0x2cc   : > { %vm1105_vm3 = vcmp.ge.f32.partialorder %v1097_v55, 0.0  ;;  %v1114_v4 = vmul.f32 %v1109_v51, %v1097_v55  ;;  %vm1106_vm4 = vcmp.ge.f32.partialorder %v1098_v58, 0.0  ;;  %v1115_v5 = vmul.f32 %v1109_v51, %v1098_v58 }
 0x2cd   : > { %v1112_v6 = vmul.f32 %v1109_v51, %v1095_v53  ;;  %v1113_v7 = vmul.f32 %v1109_v51, %v1096_v54  ;;  %vm1107_vm5 = vcmp.ge.f32.partialorder %v1099_v60, 0.0  ;;  %v1116_v9 = vmul.f32 %v1109_v51, %v1099_v60 }
 0x2ce   : > { %vm1103_vm6 = vcmp.ge.f32.partialorder %v1095_v53, 0.0  ;;  %vm1104_vm7 = vcmp.ge.f32.partialorder %v1096_v54, 0.0  ;;  %v3519_v10 = vsel %vm1105_vm3, %v1097_v55, %v1114_v4  ;;  %v3521_v11 = vsel %vm1106_vm4, %v1098_v58, %v1115_v5  ;;  %v2656_v55 = vld [vmem:[#allocation9 + $0x60] sm:$0xff]  ;;  %v2655_v58 = vld [vmem:[#allocation9 + $0x58] sm:$0xff]  ;;  %v2645_v5 = vld [vmem:[#allocation9 + $0x8] sm:$0xff] }
 0x2cf   : > { %v3523_v12 = vsel %vm1107_vm5, %v1099_v60, %v1116_v9  ;;  %vm1108_vm8 = vcmp.ge.f32.partialorder %v1100_v63, 0.0  ;;  %v1284_v17 = vadd.f32 %v3503_v15, %v3519_v10  ;;  %v1117_v21 = vmul.f32 %v1109_v51, %v1100_v63  ;;  %v2654_v60 = vld [vmem:[#allocation9 + $0x50] sm:$0xff]  ;;  %v2648_v4 = vld [vmem:[#allocation9 + $0x20] sm:$0xff] }
 0x2d0   : > { %v1286_v19 = vadd.f32 %v1246_v52, %v3523_v12  ;;  %v3528_v22 = vsel %vm1103_vm6, %v1095_v53, %v1112_v6  ;;  %v3530_v26 = vsel %vm1104_vm7, %v1096_v54, %v1113_v7  ;;  %v1285_v31 = vadd.f32 %v1243_v30, %v3521_v11  ;;  %v2659_v53 = vld [vmem:[#allocation9 + $0x78] sm:$0xff]  ;;  %v2644_v6 = vld [vmem:[#allocation9] sm:$0xff] }
 0x2d1   : > { %v3533_v25 = vsel %vm1108_vm8, %v1100_v63, %v1117_v21  ;;  %vm1101_vm9 = vcmp.ge.f32.partialorder %v1093_v13, 0.0  ;;  %vm1102_vm10 = vcmp.ge.f32.partialorder %v1094_v16, 0.0  ;;  %v1110_v38 = vmul.f32 %v1109_v51, %v1093_v13  ;;  %v2653_v63 = vld [vmem:[#allocation9 + $0x48] sm:$0xff] }
 0x2d2   : > { %v1294_v33 = vpack.c.bf16 %v1286_v19, %v1286_v19  ;;  %v1287_v37 = vadd.f32 %v1248_v32, %v3533_v25  ;;  %v1282_v15 = vadd.f32 %v3499_v2, %v3528_v22  ;;  %v1283_v39 = vadd.f32 %v3501_v8, %v3530_v26 }
 0x2d3   : > { %v1292_v40 = vpack.c.bf16 %v1284_v17, %v1284_v17  ;;  %v1111_v41 = vmul.f32 %v1109_v51, %v1094_v16  ;;  %v1293_v42 = vpack.c.bf16 %v1285_v31, %v1285_v31  ;;  %v3540_v43 = vsel %vm1101_vm9, %v1093_v13, %v1110_v38 }
 0x2d4   : > { %v1310_v56 = vunpack.c.l.b16 %v1294_v33  ;;  %v1295_v30 = vpack.c.bf16 %v1287_v37, %v1287_v37  ;;  %v1290_v45 = vpack.c.bf16 %v1282_v15, %v1282_v15  ;;  %v1291_v1 = vpack.c.bf16 %v1283_v39, %v1283_v39 }
 0x2d5   : > { %v3542_v59 = vsel %vm1102_vm10, %v1094_v16, %v1111_v41  ;;  %v1308_v46 = vunpack.c.l.b16 %v1292_v40  ;;  %v1309_v14 = vunpack.c.l.b16 %v1293_v42  ;;  %v1280_v2 = vadd.f32 %v3495_v61, %v3540_v43  ;;  %v2658_v61 = vld [vmem:[#allocation9 + $0x70] sm:$0xff] }
 0x2d6   : > { %v1311_v44 = vunpack.c.l.b16 %v1295_v30  ;;  %v1281_v8 = vadd.f32 %v3497_v62, %v3542_v59  ;;  %v1306_v48 = vunpack.c.l.b16 %v1290_v45  ;;  %v1307_v23 = vunpack.c.l.b16 %v1291_v1  ;;  %v2657_v62 = vld [vmem:[#allocation9 + $0x68] sm:$0xff] }
 0x2d7   : > { %v1314_v49 = vpack.c.b16 %v1309_v14, %v1308_v46  ;;  %v1288_v34 = vpack.c.bf16 %v1280_v2, %v1280_v2 }
 0x2d8   : > { %v1315_v47 = vpack.c.b16 %v1311_v44, %v1310_v56  ;;  %v1289_v51 = vpack.c.bf16 %v1281_v8, %v1281_v8  ;;  %v1313_v50 = vpack.c.b16 %v1307_v23, %v1306_v48 }
 0x2d9   : > { %v1304_v52 = vunpack.c.l.b16 %v1288_v34 }
 0x2da   : > { %1324 = vmatpush.bf16.msra.mxu1 %v1315_v47  ;;  %2685 = vmatpush.bf16.msrb.mxu3 %v1315_v47  ;;  %v1305_v57 = vunpack.c.l.b16 %v1289_v51 }
 0x2dc   : > { %v1312_v54 = vpack.c.b16 %v1305_v57, %v1304_v52 }
 0x2de   : > { %1325 = vmatpush.bf16.msra.mxu1 %v1314_v49  ;;  %2686 = vmatpush.bf16.msrb.mxu3 %v1314_v49 }
 0x2e2   : > { %1326 = vmatpush.bf16.msra.mxu1 %v1313_v50  ;;  %2687 = vmatpush.bf16.msrb.mxu3 %v1313_v50 }
 0x2e6   : > { %1327 = vmatpush.bf16.msra.mxu1 %v1312_v54  ;;  %2688 = vmatpush.bf16.msrb.mxu3 %v1312_v54 }
 0x2e9   : > { %2465 = vmatmul.msk.bf16.vlgmr.msra.gmra.mxu1 %vm736_vm0, %v3424_v28  ;;  %2467 = vmatmul.msk.bf16.vlgmr.msrb.gmra.mxu3 %vm736_vm0, %v3435_v35  ;;  %v2652_v28 = vld [vmem:[#allocation9 + $0x40] sm:$0xff]  ;;  %v2651_v35 = vld [vmem:[#allocation9 + $0x38] sm:$0xff] }
 0x2ea   : > { %1542 = vmatpush.bf16.msra.mxu3 %v2659_v53  ;;  %1513 = vmatpush.bf16.msrb.mxu2 %v2651_v35 }
 0x2ee   : > { %1543 = vmatpush.bf16.msra.mxu3 %v2658_v61  ;;  %1514 = vmatpush.bf16.msrb.mxu2 %v2650_v0  ;;  %v2453_v0 = vld [vmem:[#allocation12 + $0x68] sm:$0xf0] }
 0x2f2   : > { %1544 = vmatpush.bf16.msra.mxu3 %v2657_v62  ;;  %1515 = vmatpush.bf16.msrb.mxu2 %v2649_v3 }
 0x2f6   : > { %1545 = vmatpush.bf16.msra.mxu3 %v2656_v55  ;;  %1516 = vmatpush.bf16.msrb.mxu2 %v2648_v4  ;;  %v2812_v55 = vld [vmem:[%s3753_s5] ss:$0 sm:$0xff] }
 0x2f9   : > { %2466 = vmatmul.msk.bf16.gmra.mxu1 %vm736_vm0, %v3430_v29  ;;  %2468 = vmatmul.msk.bf16.gmra.mxu3 %vm736_vm0, %v3440_v36  ;;  %v2647_v29 = vld [vmem:[#allocation9 + $0x18] sm:$0xff]  ;;  %v2646_v36 = vld [vmem:[#allocation9 + $0x10] sm:$0xff] }
 0x2fa   : > { %1546 = vmatpush.bf16.msra.mxu3 %v2655_v58  ;;  %1517 = vmatpush.bf16.msrb.mxu2 %v2647_v29  ;;  %v2642_v58 = vld [vmem:[#allocation12 + $0x74] sm:$0xf] }
 0x2fe   : > { %1547 = vmatpush.bf16.msra.mxu3 %v2654_v60  ;;  %1518 = vmatpush.bf16.msrb.mxu2 %v2646_v36  ;;  %v2461_v60 = vld [vmem:[#allocation12 + $0x78] sm:$0xf0] }
 0x2ff   : > { %v2464_v35 = vor.u32 %v2642_v58, %v2461_v60  ;;  %v2630_v60 = vld [vmem:[#allocation12 + $0x14] sm:$0xf] }
 0x301   : > { %1251 = vmatpush.bf16.msrb.mxu0 %v2464_v35 }
 0x302   : > { %1548 = vmatpush.bf16.msra.mxu3 %v2653_v63  ;;  %1519 = vmatpush.bf16.msrb.mxu2 %v2645_v5  ;;  %v2640_v63 = vld [vmem:[#allocation12 + $0x64] sm:$0xf]  ;;  %v2638_v5 = vld [vmem:[#allocation12 + $0x54] sm:$0xf] }
 0x303   : > { %v2456_v4 = vor.u32 %v2640_v63, %v2453_v0  ;;  %v2413_v63 = vld [vmem:[#allocation12 + $0x18] sm:$0xf0] }
 0x304   : > { %v2416_v0 = vor.u32 %v2630_v60, %v2413_v63  ;;  %v2670_v60 = vld [vmem:[#allocation11 + $0x50] sm:$0xff] }
 0x305   : > { %1252 = vmatpush.bf16.msrb.mxu0 %v2456_v4 }
 0x306   : > { %1549 = vmatpush.bf16.msra.mxu3 %v2652_v28  ;;  %1520 = vmatpush.bf16.msrb.mxu2 %v2644_v6  ;;  %v2445_v6 = vld [vmem:[#allocation12 + $0x58] sm:$0xf0] }
 0x309   : > { %1550 = vmatmul.bf16.vlgmr.msra.gmra.mxu3 %v1312_v54 }
 0x319   : > { %1555 = vmatmul.bf16.gmra.mxu3 %v1313_v50 }
 0x329   : > { %1560 = vmatmul.bf16.gmra.mxu3 %v1314_v49 }
 0x339   : > { %1565 = vmatmul.bf16.gmra.mxu3 %v1315_v47 }
 0x366   : > { %v1329_v7 = vpop.f32.mrf.mxu1 }
 0x367   : > { %v1349_v9 = vpack.c.bf16 %v1329_v7, %v1329_v7 }
 0x369   : > { %v1365_v17 = vunpack.c.l.b16 %v1349_v9 }
 0x36c   : > { %v1339_v33 = vpop.f32.mrf.mxu3 }
 0x36d   : > { %v1353_v42 = vpack.c.bf16 %v1339_v33, %v1339_v33 }
 0x36e   : > { %v1331_v13 = vpop.f32.mrf.mxu1 }
 0x36f   : > { %v1350_v16 = vpack.c.bf16 %v1331_v13, %v1331_v13  ;;  %v1369_v30 = vunpack.c.l.b16 %v1353_v42  ;;  %v2448_v13 = vor.u32 %v2638_v5, %v2445_v6 }
 0x371   : > { %v1366_v19 = vunpack.c.l.b16 %v1350_v16  ;;  %1253 = vmatpush.bf16.msrb.mxu0 %v2448_v13 }
 0x373   : > { %v1373_v21 = vpack.c.b16 %v1366_v19, %v1365_v17 }
 0x374   : > { %v1341_v41 = vpop.f32.mrf.mxu3 }
 0x375   : > { %1521 = vmatmul.bf16.vlgmr.msrb.gmra.mxu2 %v1373_v21  ;;  %v1354_v56 = vpack.c.bf16 %v1341_v41, %v1341_v41  ;;  %v2636_v21 = vld [vmem:[#allocation12 + $0x44] sm:$0xf] }
 0x376   : > { %v1334_v31 = vpop.f32.mrf.mxu1 }
 0x377   : > { %v1351_v32 = vpack.c.bf16 %v1334_v31, %v1334_v31  ;;  %v1370_v44 = vunpack.c.l.b16 %v1354_v56  ;;  %v2437_v31 = vld [vmem:[#allocation12 + $0x48] sm:$0xf0]  ;;  %v2634_v56 = vld [vmem:[#allocation12 + $0x34] sm:$0xf] }
 0x379   : > { %v1367_v15 = vunpack.c.l.b16 %v1351_v32  ;;  %v1375_v1 = vpack.c.b16 %v1370_v44, %v1369_v30  ;;  %v2429_v30 = vld [vmem:[#allocation12 + $0x38] sm:$0xf0] }
 0x37c   : > { %v1344_v45 = vpop.f32.mrf.mxu3 }
 0x37d   : > { %v1355_v14 = vpack.c.bf16 %v1344_v45, %v1344_v45 }
 0x37e   : > { %v1336_v37 = vpop.f32.mrf.mxu1 }
 0x37f   : > { %v1352_v38 = vpack.c.bf16 %v1336_v37, %v1336_v37  ;;  %v1371_v2 = vunpack.c.l.b16 %v1355_v14 }
 0x381   : > { %v1368_v39 = vunpack.c.l.b16 %v1352_v38 }
 0x383   : > { %v1374_v40 = vpack.c.b16 %v1368_v39, %v1367_v15  ;;  %v2440_v39 = vor.u32 %v2636_v21, %v2437_v31 }
 0x384   : > { %v1346_v46 = vpop.f32.mrf.mxu3 }
 0x385   : > { %1526 = vmatmul.bf16.gmra.mxu2 %v1374_v40  ;;  %v1356_v47 = vpack.c.bf16 %v1346_v46, %v1346_v46  ;;  %1254 = vmatpush.bf16.msrb.mxu0 %v2440_v39  ;;  %v2432_v46 = vor.u32 %v2634_v56, %v2429_v30 }
 0x387   : > { %v1372_v8 = vunpack.c.l.b16 %v1356_v47 }
 0x389   : > { %v1376_v48 = vpack.c.b16 %v1372_v8, %v1371_v2  ;;  %1255 = vmatpush.bf16.msrb.mxu0 %v2432_v46  ;;  %v2675_v46 = vld [vmem:[#allocation11 + $0x78] sm:$0xff] }
 0x38a   : > { %1967 = vmatpush.bf16.msra.mxu2 %v2675_v46 }
 0x38c   : > { %v1551_v23 = vpop.f32.mrf.mxu3 }
 0x394   : > { %v1553_v49 = vpop.f32.mrf.mxu3 }
 0x395   : > { %1531 = vmatmul.bf16.gmra.mxu2 %v1375_v1 }
 0x39c   : > { %v1556_v51 = vpop.f32.mrf.mxu3 }
 0x3a4   : > { %v1558_v57 = vpop.f32.mrf.mxu3 }
 0x3a5   : > { %1536 = vmatmul.bf16.gmra.mxu2 %v1376_v48  ;;  %v2632_v48 = vld [vmem:[#allocation12 + $0x24] sm:$0xf] }
 0x3ac   : > { %v1561_v54 = vpop.f32.mrf.mxu3 }
 0x3b4   : > { %v1563_v62 = vpop.f32.mrf.mxu3 }
 0x3bc   : > { %v1566_v33 = vpop.f32.mrf.mxu3 }
 0x3f8   : > { %v1522_v34 = vpop.f32.mrf.mxu2 }
 0x3f9   : > { %v1523_v29 = vadd.f32 %v2812_v55, %v1522_v34 }
 0x3fb   : > { %v3561_v16 = vadd.f32 %v1551_v23, %v1523_v29  ;;  %v2421_v23 = vld [vmem:[#allocation12 + $0x28] sm:$0xf0]  ;;  %v2628_v29 = vld [vmem:[#allocation12 + $0x4] sm:$0xf] }
 0x3fd   : > { %v1588_v14 = vmul.f32 %v3561_v16, %v3561_v16 }
 0x400   : > { %v1524_v50 = vpop.f32.mrf.mxu2 }
 0x401   : > { %v1525_v3 = vadd.f32 %v2812_v55, %v1524_v50 }
 0x403   : > { %v3559_v7 = vadd.f32 %v1553_v49, %v1525_v3 }
 0x405   : > { %v1571_v37 = vadd.f32 %v3559_v7, %v3561_v16  ;;  %v1589_v44 = vmul.f32 %v3559_v7, %v3559_v7 }
 0x407   : > { %v1596_v34 = vadd.f32 %v1589_v44, %v1588_v14 }
 0x408   : > { %v1527_v52 = vpop.f32.mrf.mxu2 }
 0x409   : > { %v1528_v36 = vadd.f32 %v2812_v55, %v1527_v52 }
 0x40b   : > { %v3563_v17 = vadd.f32 %v1556_v51, %v1528_v36  ;;  %v2405_v36 = vld [vmem:[#allocation12 + $0x8] sm:$0xf0] }
 0x40d   : > { %v1572_v40 = vadd.f32 %v1571_v37, %v3563_v17  ;;  %v1590_v47 = vmul.f32 %v3563_v17, %v3563_v17 }
 0x410   : > { %v1529_v53 = vpop.f32.mrf.mxu2 }
 0x411   : > { %v1530_v9 = vadd.f32 %v2812_v55, %v1529_v53  ;;  %v2424_v53 = vor.u32 %v2632_v48, %v2421_v23 }
 0x413   : > { %v3567_v38 = vadd.f32 %v1558_v57, %v1530_v9  ;;  %v1568_v57 = vpop.f32.mrf.mxu3  ;;  %1256 = vmatpush.bf16.msrb.mxu0 %v2424_v53  ;;  %v2408_v9 = vor.u32 %v2628_v29, %v2405_v36  ;;  %v2671_v53 = vld [vmem:[#allocation11 + $0x58] sm:$0xff] }
 0x415   : > { %v1573_v45 = vadd.f32 %v1572_v40, %v3567_v38  ;;  %v1591_v51 = vmul.f32 %v3567_v38, %v3567_v38 }
 0x417   : > { %1257 = vmatpush.bf16.msrb.mxu0 %v2416_v0 }
 0x418   : > { %v1532_v61 = vpop.f32.mrf.mxu2 }
 0x419   : > { %v1533_v19 = vadd.f32 %v2812_v55, %v1532_v61 }
 0x41b   : > { %v3570_v41 = vadd.f32 %v1561_v54, %v1533_v19  ;;  %v1597_v54 = vadd.f32 %v1596_v34, %v1590_v47  ;;  %1258 = vmatpush.bf16.msrb.mxu0 %v2408_v9  ;;  %v2674_v47 = vld [vmem:[#allocation11 + $0x70] sm:$0xff] }
 0x41c   : > { %1968 = vmatpush.bf16.msra.mxu2 %v2674_v47 }
 0x41d   : > { %v1574_v8 = vadd.f32 %v1573_v45, %v3570_v41  ;;  %v1592_v61 = vmul.f32 %v3570_v41, %v3570_v41 }
 0x41e   : > { %1259 = vmatmul.bf16.vlgmr.msrb.gmra.mxu0 %v3421_v27 }
 0x420   : > { %v1534_v28 = vpop.f32.mrf.mxu2 }
 0x421   : > { %v1535_v15 = vadd.f32 %v2812_v55, %v1534_v28  ;;  %v1598_v28 = vadd.f32 %v1597_v54, %v1591_v51  ;;  %v2673_v51 = vld [vmem:[#allocation11 + $0x68] sm:$0xff] }
 0x422   : > { %1969 = vmatpush.bf16.msra.mxu2 %v2673_v51 }
 0x423   : > { %v3575_v1 = vadd.f32 %v1563_v62, %v1535_v15  ;;  %v1599_v4 = vadd.f32 %v1598_v28, %v1592_v61 }
 0x425   : > { %v1575_v52 = vadd.f32 %v1574_v8, %v3575_v1  ;;  %v1593_v35 = vmul.f32 %v3575_v1, %v3575_v1 }
 0x427   : > { %v1600_v6 = vadd.f32 %v1599_v4, %v1593_v35  ;;  %v2669_v35 = vld [vmem:[#allocation11 + $0x48] sm:$0xff]  ;;  %v2668_v4 = vld [vmem:[#allocation11 + $0x40] sm:$0xff] }
 0x428   : > { %v1537_v32 = vpop.f32.mrf.mxu2 }
 0x429   : > { %v1538_v42 = vadd.f32 %v2812_v55, %v1537_v32 }
 0x42b   : > { %v3581_v2 = vadd.f32 %v1566_v33, %v1538_v42 }
 0x42d   : > { %v1576_v58 = vadd.f32 %v1575_v52, %v3581_v2  ;;  %v1594_v3 = vmul.f32 %v3581_v2, %v3581_v2  ;;  %v2672_v52 = vld [vmem:[#allocation11 + $0x60] sm:$0xff] }
 0x42e   : > { %1264 = vmatmul.bf16.gmra.mxu0 %v3418_v24  ;;  %1970 = vmatpush.bf16.msra.mxu2 %v2672_v52 }
 0x42f   : > { %v1601_v13 = vadd.f32 %v1600_v6, %v1594_v3 }
 0x430   : > { %v1539_v49 = vpop.f32.mrf.mxu2 }
 0x431   : > { %v1540_v50 = vadd.f32 %v2812_v55, %v1539_v49 }
 0x432   : > { %1971 = vmatpush.bf16.msra.mxu2 %v2671_v53 }
 0x433   : > { %v3589_v62 = vadd.f32 %v1568_v57, %v1540_v50 }
 0x435   : > { %v1577_v55 = vadd.f32 %v1576_v58, %v3589_v62  ;;  %v1595_v5 = vmul.f32 %v3589_v62, %v3589_v62 }
 0x436   : > { %1972 = vmatpush.bf16.msra.mxu2 %v2670_v60 }
 0x437   : > { %1578 = vadd.xlane.f32.xlu1 %v1577_v55  ;;  %v1602_v19 = vadd.f32 %v1601_v13, %v1595_v5 }
 0x43a   : > { %1973 = vmatpush.bf16.msra.mxu2 %v2669_v35 }
 0x43e   : > { %1269 = vmatmul.bf16.gmra.mxu0 %v3415_v20  ;;  %1974 = vmatpush.bf16.msra.mxu2 %v2668_v4 }
 0x43f   : > { %1603 = vadd.xlane.f32.xlu1 %v1602_v19 }
 0x44e   : > { %1274 = vmatmul.bf16.gmra.mxu0 %v3412_v18 }
 0x49b   : > { %v3603_v24 = vpop.f32.mrf.mxu0 }
 0x4a3   : > { %v3605_v18 = vpop.f32.mrf.mxu0 }
 0x4aa   : > { %v1579_v21 = vpop.xlane.xlu1 %1578 }
 0x4ab   : > { %v1580_v31 = vrot.slane %v1579_v21, 4  ;;  %v3607_v49 = vpop.f32.mrf.mxu0 }
 0x4ad   : > { %v1581_v33 = vadd.f32 %v1580_v31, %v1579_v21  ;;  %v2813_v21 = vld [vmem:[%s3759_s11] ss:$0 sm:$0xff] }
 0x4af   : > { %v1582_v32 = vrot.slane %v1581_v33, 2 }
 0x4b1   : > { %v1583_v37 = vadd.f32 %v1582_v32, %v1581_v33 }
 0x4b2   : > { %v1604_v15 = vpop.xlane.xlu1 %1603 }
 0x4b3   : > { %v1605_v39 = vrot.slane %v1604_v15, 4  ;;  %v1584_v40 = vrot.slane %v1583_v37, 1  ;;  %v3609_v57 = vpop.f32.mrf.mxu0 }
 0x4b5   : > { %v1606_v42 = vadd.f32 %v1605_v39, %v1604_v15  ;;  %v1585_v56 = vadd.f32 %v1584_v40, %v1583_v37  ;;  %v1680_v15 = vstv %s2315_s25 }
 0x4b7   : > { %v1607_v30 = vrot.slane %v1606_v42, 2  ;;  %2693 = vpush %v1585_v56  ;;  %v2814_v56 = vld [vmem:[%s3760_s12] ss:$0 sm:$0xff] }
 0x4b9   : > { %v1608_v44 = vadd.f32 %v1607_v30, %v1606_v42 }
 0x4bb   : > { %v1609_v27 = vrot.slane %v1608_v44, 1  ;;  %v3611_v0 = vpop.f32.mrf.mxu0 }
 0x4bd   : > { %v1610_v45 = vadd.f32 %v1609_v27, %v1608_v44 }
 0x4bf   : > { %2695 = vpush %v1610_v45 }
 0x4c3   : > { %v3613_v9 = vpop.f32.mrf.mxu0 }
 0x4cb   : > { %v1275_v51 = vpop.f32.mrf.mxu0 }
 0x4e8   : > { %s2694_s2 = spop %2693 }
 0x4e9   : > { %v1587_v20 = vstv %s2694_s2  ;;  %s3813_s2 = sld [smem:[#allocation36_spill]] }
 0x4ea   : > { %v1613_v14 = vmul.f32 0.00048828125, %v1587_v20 }
 0x4ec   : > { %v1615_v23 = vmul.f32 %v1613_v14, %v1613_v14  ;;  %v1634_v13 = vsub.f32 %v3563_v17, %v1613_v14  ;;  %v1635_v19 = vsub.f32 %v3567_v38, %v1613_v14  ;;  %v1636_v31 = vsub.f32 %v3570_v41, %v1613_v14 }
 0x4ed   : > { %v1637_v33 = vsub.f32 %v3575_v1, %v1613_v14  ;;  %v1638_v32 = vsub.f32 %v3581_v2, %v1613_v14  ;;  %v1639_v39 = vsub.f32 %v3589_v62, %v1613_v14  ;;  %v1632_v40 = vsub.f32 %v3561_v16, %v1613_v14 }
 0x4ee   : > { %v1633_v17 = vsub.f32 %v3559_v7, %v1613_v14 }
 0x4f0   : > { %s2696_s30 = spop %2695 }
 0x4f1   : > { %v1612_v8 = vstv %s2696_s30  ;;  %s2676_s30 = sshll.u32 %s3237_s28, 6  ;;  %s663_s28 = scalar_lea.vmem [#allocation15], %s2308_s26 }
 0x4f2   : > { %v1614_v48 = vmul.f32 0.00048828125, %v1612_v8  ;;  %s2142_s27 = scalar_lea.hbm %s3814_s4, %s2676_s30  ;;  %s2143_s20 = sshll.u32 %s663_s28, 4  ;;  %s2144_s20 = int_to_ptr.vmem [resolvable:$true] %s2143_s20 }
 0x4f3   : > { %s2131_s26 = scalar_lea.sflag [#allocation4], %s3378_s13 }
 0x4f4   : > { %v1616_v34 = vsub.f32 %v1614_v48, %v1615_v23 }
 0x4f6   : > { %v1617_v50 = vmax.f32 %v1616_v34, 0.0 }
 0x4f8   : > { %2822 = vrsqrt.f32 %v1617_v50  ;;  %vm1625_vm11 = vcmp.eq.f32.partialorder %v1617_v50, inf  ;;  %v1628_v29 = vand.u32 2147483648, %v1617_v50  ;;  %vm1627_vm12 = vcmp.eq.f32.partialorder %v1617_v50, 0.0 }
 0x4fe   : > { %v2823_v54 = vpop.eup %2822 }
 0x4ff   : > { %v1619_v61 = vmul.f32 %v2823_v54, %v1617_v50 }
 0x501   : > { %v1620_v58 = vmul.f32 %v2823_v54, %v1619_v61 }
 0x503   : > { %v1621_v63 = vmul.f32 0.5, %v1620_v58 }
 0x505   : > { %v1622_v28 = vsub.f32 1.5, %v1621_v63 }
 0x507   : > { %v1623_v55 = vmul.f32 %v2823_v54, %v1622_v28 }
 0x509   : > { %v1624_v3 = vmul.f32 %v1623_v55, %v1617_v50 }
 0x50b   : > { %v1626_v36 = vsel %vm1625_vm11, %v1617_v50, %v1624_v3 }
 0x50c   : > { %v1629_v5 = vsel %vm1627_vm12, %v1628_v29, %v1626_v36 }
 0x50d   : > { %v1630_v6 = vadd.f32 1e-05, %v1629_v5 }
 0x50f   : > { %2824 = vrcp.f32 %v1630_v6 }
 0x515   : > { %v2825_v37 = vpop.eup %2824 }
 0x516   : > { %v1642_v42 = vmul.f32 %v2825_v37, %v1634_v13  ;;  %v1643_v38 = vmul.f32 %v2825_v37, %v1635_v19  ;;  %v1644_v30 = vmul.f32 %v2825_v37, %v1636_v31  ;;  %v1645_v41 = vmul.f32 %v2825_v37, %v1637_v33 }
 0x517   : > { %v1646_v44 = vmul.f32 %v2825_v37, %v1638_v32  ;;  %v1647_v1 = vmul.f32 %v2825_v37, %v1639_v39  ;;  %v1640_v27 = vmul.f32 %v2825_v37, %v1632_v40  ;;  %v1641_v2 = vmul.f32 %v2825_v37, %v1633_v17  ;;  %v1277_v40 = vpop.f32.mrf.mxu0 }
 0x518   : > { %v1654_v45 = vmul.f32 %v2813_v21, %v1642_v42  ;;  %v1655_v20 = vmul.f32 %v2813_v21, %v1643_v38  ;;  %v1656_v46 = vmul.f32 %v2813_v21, %v1644_v30  ;;  %v1657_v62 = vmul.f32 %v2813_v21, %v1645_v41 }
 0x519   : > { %v1658_v47 = vmul.f32 %v2813_v21, %v1646_v44  ;;  %v1659_v16 = vmul.f32 %v2813_v21, %v1647_v1  ;;  %v1652_v8 = vmul.f32 %v2813_v21, %v1640_v27  ;;  %v1653_v7 = vmul.f32 %v2813_v21, %v1641_v2 }
 0x51a   : > { %v1666_v14 = vadd.f32 %v2814_v56, %v1654_v45  ;;  %v1667_v48 = vadd.f32 %v2814_v56, %v1655_v20  ;;  %v1668_v23 = vadd.f32 %v2814_v56, %v1656_v46  ;;  %v1669_v34 = vadd.f32 %v2814_v56, %v1657_v62 }
 0x51b   : > { %v1670_v50 = vadd.f32 %v2814_v56, %v1658_v47  ;;  %v1671_v52 = vadd.f32 %v2814_v56, %v1659_v16  ;;  %v1664_v63 = vadd.f32 %v2814_v56, %v1652_v8  ;;  %v1665_v28 = vadd.f32 %v2814_v56, %v1653_v7  ;;  %v2831_v7 = vld [vmem:[%s3382_s8 + $0x8] sm:$0xff] }
 0x51c   : > { %vm1674_vm13 = vcmp.ge.f32.partialorder %v1666_v14, 0.0  ;;  %vm1675_vm14 = vcmp.ge.f32.partialorder %v1667_v48, 0.0  ;;  %v1683_v53 = vmul.f32 %v1680_v15, %v1666_v14  ;;  %v1684_v54 = vmul.f32 %v1680_v15, %v1667_v48 }
 0x51d   : > { %vm1676_vm15 = vcmp.ge.f32.partialorder %v1668_v23, 0.0  ;;  %v1685_v61 = vmul.f32 %v1680_v15, %v1668_v23  ;;  %vm1677_vm1 = vcmp.ge.f32.partialorder %v1669_v34, 0.0  ;;  %v1686_v58 = vmul.f32 %v1680_v15, %v1669_v34 }
 0x51e   : > { %vm1678_vm2 = vcmp.ge.f32.partialorder %v1670_v50, 0.0  ;;  %v1687_v60 = vmul.f32 %v1680_v15, %v1670_v50  ;;  %v1691_v35 = vsel %vm1674_vm13, %v1666_v14, %v1683_v53  ;;  %v1692_v55 = vsel %vm1675_vm14, %v1667_v48, %v1684_v54  ;;  %v2667_v14 = vld [vmem:[#allocation11 + $0x38] sm:$0xff]  ;;  %v2666_v48 = vld [vmem:[#allocation11 + $0x30] sm:$0xff]  ;;  %v2661_v54 = vld [vmem:[#allocation11 + $0x8] sm:$0xff] }
 0x51f   : > { %v1693_v3 = vsel %vm1676_vm15, %v1668_v23, %v1685_v61  ;;  %v1694_v4 = vsel %vm1677_vm1, %v1669_v34, %v1686_v58  ;;  %vm1679_vm3 = vcmp.ge.f32.partialorder %v1671_v52, 0.0  ;;  %v1688_v13 = vmul.f32 %v1680_v15, %v1671_v52  ;;  %1938 = vmatpush.bf16.msrb.mxu1 %v2667_v14  ;;  %v2832_v23 = vld [vmem:[%s3382_s8 + $0x10] sm:$0xff]  ;;  %v2833_v34 = vld [vmem:[%s3382_s8 + $0x18] sm:$0xff]  ;;  %v2660_v61 = vld [vmem:[#allocation11] sm:$0xff] }
 0x520   : > { %v1701_v29 = vadd.f32 %v1693_v3, %v3519_v10  ;;  %v1702_v36 = vadd.f32 %v1694_v4, %v3521_v11  ;;  %v1695_v5 = vsel %vm1678_vm2, %v1670_v50, %v1687_v60  ;;  %v1699_v19 = vadd.f32 %v1691_v35, %v3528_v22  ;;  %v2664_v50 = vld [vmem:[#allocation11 + $0x20] sm:$0xff]  ;;  %v2662_v53 = vld [vmem:[#allocation11 + $0x10] sm:$0xff] }
 0x521   : > { %v1703_v6 = vadd.f32 %v1695_v5, %v3523_v12  ;;  %v1700_v21 = vadd.f32 %v1692_v55, %v3530_v26  ;;  %v1696_v32 = vsel %vm1679_vm3, %v1671_v52, %v1688_v13  ;;  %vm1672_vm4 = vcmp.ge.f32.partialorder %v1664_v63, 0.0  ;;  %v2663_v52 = vld [vmem:[#allocation11 + $0x18] sm:$0xff] }
 0x522   : > { %v1709_v31 = vadd.f32 %v1701_v29, %v3611_v0  ;;  %v1710_v37 = vadd.f32 %v1702_v36, %v3613_v9  ;;  %v1704_v10 = vadd.f32 %v1696_v32, %v3533_v25  ;;  %vm1673_vm5 = vcmp.ge.f32.partialorder %v1665_v28, 0.0 }
 0x523   : > { %v1711_v33 = vadd.f32 %v1703_v6, %v1275_v51  ;;  %v1681_v11 = vmul.f32 %v1680_v15, %v1664_v63  ;;  %v1682_v17 = vmul.f32 %v1680_v15, %v1665_v28  ;;  %v1707_v12 = vadd.f32 %v1699_v19, %v3607_v49  ;;  %1939 = vmatpush.bf16.msrb.mxu1 %v2666_v48  ;;  %v2665_v51 = vld [vmem:[#allocation11 + $0x28] sm:$0xff] }
 0x524   : > { %v1712_v42 = vadd.f32 %v1704_v10, %v1277_v40  ;;  %v1708_v26 = vadd.f32 %v1700_v21, %v3609_v57  ;;  %v1717_v38 = vpack.c.bf16 %v1709_v31, %v1709_v31  ;;  %v1718_v30 = vpack.c.bf16 %v1710_v37, %v1710_v37 }
 0x525   : > { %v1719_v39 = vpack.c.bf16 %v1711_v33, %v1711_v33  ;;  %v1689_v22 = vsel %vm1672_vm4, %v1664_v63, %v1681_v11  ;;  %v1690_v0 = vsel %vm1673_vm5, %v1665_v28, %v1682_v17  ;;  %v1715_v27 = vpack.c.bf16 %v1707_v12, %v1707_v12 }
 0x526   : > { %v1697_v56 = vadd.f32 %v1689_v22, %v3540_v43  ;;  %v1720_v9 = vpack.c.bf16 %v1712_v42, %v1712_v42  ;;  %v1698_v25 = vadd.f32 %v1690_v0, %v3542_v59  ;;  %v1716_v49 = vpack.c.bf16 %v1708_v26, %v1708_v26 }
 0x527   : > { %v1735_v41 = vunpack.c.l.b16 %v1719_v39  ;;  %v1733_v45 = vunpack.c.l.b16 %v1717_v38  ;;  %v1734_v57 = vunpack.c.l.b16 %v1718_v30  ;;  %v1731_v47 = vunpack.c.l.b16 %v1715_v27  ;;  %1940 = vmatpush.bf16.msrb.mxu1 %v2665_v51 }
 0x528   : > { %v1705_v44 = vadd.f32 %v1697_v56, %v3603_v24  ;;  %v1736_v1 = vunpack.c.l.b16 %v1720_v9  ;;  %v1706_v15 = vadd.f32 %v1698_v25, %v3605_v18  ;;  %v1732_v16 = vunpack.c.l.b16 %v1716_v49  ;;  %v2830_v18 = vld [vmem:[%s3382_s8] sm:$0xff]  ;;  %s2145_s8 = sshll.u32 %s2142_s27, 4  ;;  %s2146_s8 = int_to_ptr.hbm [resolvable:$true] %s2145_s8 }
 0x529   : > { %v1739_v59 = vpack.c.b16 %v1734_v57, %v1733_v45  ;;  %v2815_v49 = vld [vmem:[%s3811_s14] ss:$0 sm:$0xff]  ;;  %s3043_s14 = sshra.s32 %s2146_s8, 4  ;;  %s3044_s14 = int_to_ptr.hbm [resolvable:$true] %s3043_s14 }
 0x52a   : > { %v1713_v2 = vpack.c.bf16 %v1705_v44, %v1705_v44  ;;  %v1740_v20 = vpack.c.b16 %v1736_v1, %v1735_v41  ;;  %v1714_v46 = vpack.c.bf16 %v1706_v15, %v1706_v15  ;;  %v1738_v24 = vpack.c.b16 %v1732_v16, %v1731_v47  ;;  %p3050_p7 = scmp.lt.s32.totalorder %s3044_s14, %s3814_s4 }
 0x52b   : > { %1941 = vmatpush.bf16.msrb.mxu1 %v2664_v50 }
 0x52c   : > { %v1729_v43 = vunpack.c.l.b16 %v1713_v2  ;;  %1749 = vmatpush.bf16.msra.mxu0 %v1740_v20  ;;  %v1730_v62 = vunpack.c.l.b16 %v1714_v46 }
 0x52e   : > { %v1737_v8 = vpack.c.b16 %v1730_v62, %v1729_v43 }
 0x52f   : > { %1942 = vmatpush.bf16.msrb.mxu1 %v2663_v52 }
 0x530   : > { %1975 = vmatmul.bf16.vlgmr.msra.gmra.mxu2 %v1737_v8  ;;  %1750 = vmatpush.bf16.msra.mxu0 %v1739_v59 }
 0x533   : > { %1943 = vmatpush.bf16.msrb.mxu1 %v2662_v53 }
 0x534   : > { %1751 = vmatpush.bf16.msra.mxu0 %v1738_v24 }
 0x537   : > { %1944 = vmatpush.bf16.msrb.mxu1 %v2661_v54 }
 0x538   : > { %1752 = vmatpush.bf16.msra.mxu0 %v1737_v8 }
 0x53b   : > { %2533 = vmatmul.msk.bf16.vlgmr.msra.gmra.mxu0 %vm736_vm0, %v2830_v18  ;;  %1945 = vmatpush.bf16.msrb.mxu1 %v2660_v61 }
 0x540   : > { %1980 = vmatmul.bf16.gmra.mxu2 %v1738_v24 }
 0x54b   : > { %2534 = vmatmul.msk.bf16.gmra.mxu0 %vm736_vm0, %v2831_v7 }
 0x550   : > { %1985 = vmatmul.bf16.gmra.mxu2 %v1739_v59 }
 0x55b   : > { %2535 = vmatmul.msk.bf16.gmra.mxu0 %vm736_vm0, %v2832_v23 }
 0x560   : > { %1990 = vmatmul.bf16.gmra.mxu2 %v1740_v20 }
 0x56b   : > { %2536 = vmatmul.msk.bf16.gmra.mxu0 %vm736_vm0, %v2833_v34 }
 0x5b3   : > { %v1976_v38 = vpop.f32.mrf.mxu2 }
 0x5b8   : > { %v1754_v58 = vpop.f32.mrf.mxu0 }
 0x5b9   : > { %v1774_v60 = vpack.c.bf16 %v1754_v58, %v1754_v58 }
 0x5bb   : > { %v1790_v35 = vunpack.c.l.b16 %v1774_v60  ;;  %v1978_v0 = vpop.f32.mrf.mxu2 }
 0x5c0   : > { %v1756_v63 = vpop.f32.mrf.mxu0 }
 0x5c1   : > { %v1775_v28 = vpack.c.bf16 %v1756_v63, %v1756_v63 }
 0x5c3   : > { %v1791_v55 = vunpack.c.l.b16 %v1775_v28  ;;  %v1981_v30 = vpop.f32.mrf.mxu2 }
 0x5c5   : > { %v1798_v3 = vpack.c.b16 %v1791_v55, %v1790_v35 }
 0x5c7   : > { %1946 = vmatmul.bf16.vlgmr.msrb.gmra.mxu1 %v1798_v3 }
 0x5c8   : > { %v1759_v4 = vpop.f32.mrf.mxu0 }
 0x5c9   : > { %v1776_v29 = vpack.c.bf16 %v1759_v4, %v1759_v4 }
 0x5cb   : > { %v1792_v6 = vunpack.c.l.b16 %v1776_v29  ;;  %v1983_v25 = vpop.f32.mrf.mxu2 }
 0x5d0   : > { %v1761_v36 = vpop.f32.mrf.mxu0 }
 0x5d1   : > { %v1777_v5 = vpack.c.bf16 %v1761_v36, %v1761_v36 }
 0x5d3   : > { %v1793_v13 = vunpack.c.l.b16 %v1777_v5  ;;  %v1986_v1 = vpop.f32.mrf.mxu2 }
 0x5d5   : > { %v1799_v19 = vpack.c.b16 %v1793_v13, %v1792_v6 }
 0x5d7   : > { %1951 = vmatmul.bf16.gmra.mxu1 %v1799_v19 }
 0x5d8   : > { %v1764_v21 = vpop.f32.mrf.mxu0 }
 0x5d9   : > { %v1778_v31 = vpack.c.bf16 %v1764_v21, %v1764_v21 }
 0x5db   : > { %v1794_v37 = vunpack.c.l.b16 %v1778_v31  ;;  %v1988_v27 = vpop.f32.mrf.mxu2 }
 0x5e0   : > { %v1766_v33 = vpop.f32.mrf.mxu0 }
 0x5e1   : > { %v1779_v32 = vpack.c.bf16 %v1766_v33, %v1766_v33 }
 0x5e3   : > { %v1795_v10 = vunpack.c.l.b16 %v1779_v32  ;;  %v1991_v59 = vpop.f32.mrf.mxu2 }
 0x5e5   : > { %v1800_v11 = vpack.c.b16 %v1795_v10, %v1794_v37 }
 0x5e7   : > { %1956 = vmatmul.bf16.gmra.mxu1 %v1800_v11 }
 0x5e8   : > { %v1769_v39 = vpop.f32.mrf.mxu0 }
 0x5e9   : > { %v1780_v40 = vpack.c.bf16 %v1769_v39, %v1769_v39 }
 0x5eb   : > { %v1796_v42 = vunpack.c.l.b16 %v1780_v40  ;;  %v1993_v55 = vpop.f32.mrf.mxu2 }
 0x5f0   : > { %v1771_v17 = vpop.f32.mrf.mxu0 }
 0x5f1   : > { %v1781_v12 = vpack.c.bf16 %v1771_v17, %v1771_v17 }
 0x5f3   : > { %v1797_v22 = vunpack.c.l.b16 %v1781_v12 }
 0x5f5   : > { %v1801_v26 = vpack.c.b16 %v1797_v22, %v1796_v42 }
 0x5f7   : > { %1961 = vmatmul.bf16.gmra.mxu1 %v1801_v26 }
 0x644   : > { %v1947_v56 = vpop.f32.mrf.mxu1 }
 0x645   : > { %v1948_v57 = vadd.f32 %v2815_v49, %v1947_v56 }
 0x647   : > { %v3656_v62 = vadd.f32 %v1976_v38, %v1948_v57 }
 0x649   : > { %v2013_v52 = vmul.f32 %v3656_v62, %v3656_v62 }
 0x64c   : > { %v1949_v41 = vpop.f32.mrf.mxu1 }
 0x64d   : > { %v1950_v45 = vadd.f32 %v2815_v49, %v1949_v41 }
 0x64f   : > { %v3654_v46 = vadd.f32 %v1978_v0, %v1950_v45 }
 0x651   : > { %v1996_v24 = vadd.f32 %v3654_v46, %v3656_v62  ;;  %v2014_v34 = vmul.f32 %v3654_v46, %v3654_v46 }
 0x653   : > { %v2021_v60 = vadd.f32 %v2014_v34, %v2013_v52 }
 0x654   : > { %v1952_v9 = vpop.f32.mrf.mxu1 }
 0x655   : > { %v1953_v20 = vadd.f32 %v2815_v49, %v1952_v9 }
 0x657   : > { %v3658_v47 = vadd.f32 %v1981_v30, %v1953_v20 }
 0x659   : > { %v1997_v14 = vadd.f32 %v1996_v24, %v3658_v47  ;;  %v2015_v53 = vmul.f32 %v3658_v47, %v3658_v47 }
 0x65b   : > { %v2022_v3 = vadd.f32 %v2021_v60, %v2015_v53  ;;  %v2816_v53 = vld [vmem:[%s3812_s16] ss:$0 sm:$0xff] }
 0x65c   : > { %v1954_v44 = vpop.f32.mrf.mxu1 }
 0x65d   : > { %v1955_v43 = vadd.f32 %v2815_v49, %v1954_v44 }
 0x65f   : > { %v3662_v18 = vadd.f32 %v1983_v25, %v1955_v43 }
 0x661   : > { %v1998_v51 = vadd.f32 %v1997_v14, %v3662_v18  ;;  %v2016_v63 = vmul.f32 %v3662_v18, %v3662_v18 }
 0x663   : > { %v2023_v5 = vadd.f32 %v2022_v3, %v2016_v63 }
 0x664   : > { %v1957_v15 = vpop.f32.mrf.mxu1 }
 0x665   : > { %v1958_v16 = vadd.f32 %v2815_v49, %v1957_v15 }
 0x667   : > { %v3665_v48 = vadd.f32 %v1986_v1, %v1958_v16 }
 0x669   : > { %v1999_v61 = vadd.f32 %v1998_v51, %v3665_v48  ;;  %v2017_v4 = vmul.f32 %v3665_v48, %v3665_v48 }
 0x66b   : > { %v2024_v21 = vadd.f32 %v2023_v5, %v2017_v4 }
 0x66c   : > { %v1959_v2 = vpop.f32.mrf.mxu1 }
 0x66d   : > { %v1960_v7 = vadd.f32 %v2815_v49, %v1959_v2 }
 0x66f   : > { %v3670_v50 = vadd.f32 %v1988_v27, %v1960_v7 }
 0x671   : > { %v2000_v35 = vadd.f32 %v1999_v61, %v3670_v50  ;;  %v2018_v6 = vmul.f32 %v3670_v50, %v3670_v50 }
 0x673   : > { %v2025_v33 = vadd.f32 %v2024_v21, %v2018_v6 }
 0x674   : > { %v1962_v8 = vpop.f32.mrf.mxu1 }
 0x675   : > { %v1963_v23 = vadd.f32 %v2815_v49, %v1962_v8 }
 0x677   : > { %v3676_v54 = vadd.f32 %v1991_v59, %v1963_v23 }
 0x679   : > { %v2001_v36 = vadd.f32 %v2000_v35, %v3676_v54  ;;  %v2019_v19 = vmul.f32 %v3676_v54, %v3676_v54 }
 0x67b   : > { %v2026_v32 = vadd.f32 %v2025_v33, %v2019_v19 }
 0x67c   : > { %v1964_v58 = vpop.f32.mrf.mxu1 }
 0x67d   : > { %v1965_v28 = vadd.f32 %v2815_v49, %v1964_v58 }
 0x67f   : > { %v3684_v29 = vadd.f32 %v1993_v55, %v1965_v28 }
 0x681   : > { %v2002_v13 = vadd.f32 %v2001_v36, %v3684_v29  ;;  %v2020_v31 = vmul.f32 %v3684_v29, %v3684_v29 }
 0x683   : > { %2003 = vadd.xlane.f32.xlu2 %v2002_v13  ;;  %v2027_v37 = vadd.f32 %v2026_v32, %v2020_v31 }
 0x68b   : > { %2028 = vadd.xlane.f32.xlu2 %v2027_v37 }
 0x6f6   : > { %v2004_v10 = vpop.xlane.xlu2 %2003 }
 0x6f7   : > { %v2005_v11 = vrot.slane %v2004_v10, 4 }
 0x6f9   : > { %v2006_v39 = vadd.f32 %v2005_v11, %v2004_v10  ;;  %v2105_v11 = vstv %s3694_s6 }
 0x6fb   : > { %v2007_v40 = vrot.slane %v2006_v39, 2 }
 0x6fd   : > { %v2008_v17 = vadd.f32 %v2007_v40, %v2006_v39 }
 0x6fe   : > { %v2029_v12 = vpop.xlane.xlu2 %2028 }
 0x6ff   : > { %v2030_v42 = vrot.slane %v2029_v12, 4  ;;  %v2009_v22 = vrot.slane %v2008_v17, 1 }
 0x701   : > { %v2031_v26 = vadd.f32 %v2030_v42, %v2029_v12  ;;  %v2010_v38 = vadd.f32 %v2009_v22, %v2008_v17 }
 0x703   : > { %v2032_v0 = vrot.slane %v2031_v26, 2  ;;  %2697 = vpush %v2010_v38 }
 0x705   : > { %v2033_v56 = vadd.f32 %v2032_v0, %v2031_v26 }
 0x707   : > { %v2034_v30 = vrot.slane %v2033_v56, 1 }
 0x709   : > { %v2035_v41 = vadd.f32 %v2034_v30, %v2033_v56 }
 0x70b   : > { %2699 = vpush %v2035_v41 }
 0x734   : > { %s2698_s0 = spop %2697 }
 0x735   : > { %v2012_v9 = vstv %s2698_s0  ;;  %s3045_s0 = scalar_lea.hbm %s3044_s14, 64 }
 0x736   : > { %v2038_v25 = vmul.f32 0.0009765625, %v2012_v9  ;;  %p3046_p1 = scmp.ne.s32.totalorder %s3044_s14, %s3045_s0  ;;  %p3051_p9 = scmp.lt.s32.totalorder %s3049_s15, %s3045_s0 }
 0x738   : > { %v2040_v15 = vmul.f32 %v2038_v25, %v2038_v25  ;;  %v2057_v23 = vsub.f32 %v3656_v62, %v2038_v25  ;;  %v2058_v34 = vsub.f32 %v3654_v46, %v2038_v25  ;;  %v2059_v51 = vsub.f32 %v3658_v47, %v2038_v25  ;;  %v2817_v47 = vld [vmem:[%s3813_s2] ss:$0 sm:$0xff]  ;;  %p3047_p3 = pnand %p3046_p1, %p3315_p0  ;;  %p3052_p5 = por %p3051_p9, %p3050_p7 }
 0x739   : > { %v2060_v52 = vsub.f32 %v3662_v18, %v2038_v25  ;;  %v2061_v58 = vsub.f32 %v3665_v48, %v2038_v25  ;;  %v2062_v60 = vsub.f32 %v3670_v50, %v2038_v25  ;;  %v2063_v63 = vsub.f32 %v3676_v54, %v2038_v25 }
 0x73a   : > { %v2064_v28 = vsub.f32 %v3684_v29, %v2038_v25  ;;  %p3048_p13 = pneg %p3047_p3 }
 0x73c   : > { %s2700_s18 = spop %2699  ;;  %p3053_p8 = pnand %p3052_p5, %p3048_p13 }
 0x73d   : > { %v2037_v44 = vstv %s2700_s18 }
 0x73e   : > { %v2039_v1 = vmul.f32 0.0009765625, %v2037_v44 }
 0x740   : > { %v2041_v27 = vsub.f32 %v2039_v1, %v2040_v15 }
 0x742   : > { %v2042_v49 = vmax.f32 %v2041_v27, 0.0 }
 0x744   : > { %2826 = vrsqrt.f32 %v2042_v49  ;;  %vm2050_vm0 = vcmp.eq.f32.partialorder %v2042_v49, inf  ;;  %v2053_v8 = vand.u32 2147483648, %v2042_v49  ;;  %vm2052_vm6 = vcmp.eq.f32.partialorder %v2042_v49, 0.0 }
 0x74a   : > { %v2827_v2 = vpop.eup %2826 }
 0x74b   : > { %v2044_v45 = vmul.f32 %v2827_v2, %v2042_v49 }
 0x74d   : > { %v2045_v57 = vmul.f32 %v2827_v2, %v2044_v45 }
 0x74f   : > { %v2046_v20 = vmul.f32 0.5, %v2045_v57 }
 0x751   : > { %v2047_v43 = vsub.f32 1.5, %v2046_v20 }
 0x753   : > { %v2048_v16 = vmul.f32 %v2827_v2, %v2047_v43 }
 0x755   : > { %v2049_v59 = vmul.f32 %v2048_v16, %v2042_v49 }
 0x757   : > { %v2051_v24 = vsel %vm2050_vm0, %v2042_v49, %v2049_v59 }
 0x758   : > { %v2054_v7 = vsel %vm2052_vm6, %v2053_v8, %v2051_v24 }
 0x759   : > { %v2055_v14 = vadd.f32 1e-05, %v2054_v7 }
 0x75b   : > { %2828 = vrcp.f32 %v2055_v14 }
 0x761   : > { %v2829_v61 = vpop.eup %2828 }
 0x762   : > { %v2065_v62 = vmul.f32 %v2829_v61, %v2057_v23  ;;  %v2066_v35 = vmul.f32 %v2829_v61, %v2058_v34  ;;  %v2067_v46 = vmul.f32 %v2829_v61, %v2059_v51  ;;  %v2068_v55 = vmul.f32 %v2829_v61, %v2060_v52 }
 0x763   : > { %v2069_v18 = vmul.f32 %v2829_v61, %v2061_v58  ;;  %v2070_v3 = vmul.f32 %v2829_v61, %v2062_v60  ;;  %v2071_v4 = vmul.f32 %v2829_v61, %v2063_v63  ;;  %v2072_v36 = vmul.f32 %v2829_v61, %v2064_v28 }
 0x764   : > { %v2077_v48 = vmul.f32 %v2816_v53, %v2065_v62  ;;  %v2078_v5 = vmul.f32 %v2816_v53, %v2066_v35  ;;  %v2079_v50 = vmul.f32 %v2816_v53, %v2067_v46  ;;  %v2080_v54 = vmul.f32 %v2816_v53, %v2068_v55 }
 0x765   : > { %v2081_v6 = vmul.f32 %v2816_v53, %v2069_v18  ;;  %v2082_v29 = vmul.f32 %v2816_v53, %v2070_v3  ;;  %v2083_v13 = vmul.f32 %v2816_v53, %v2071_v4  ;;  %v2084_v19 = vmul.f32 %v2816_v53, %v2072_v36 }
 0x766   : > { %v2089_v21 = vadd.f32 %v2817_v47, %v2077_v48  ;;  %v2090_v31 = vadd.f32 %v2817_v47, %v2078_v5  ;;  %v2091_v33 = vadd.f32 %v2817_v47, %v2079_v50  ;;  %v2092_v32 = vadd.f32 %v2817_v47, %v2080_v54 }
 0x767   : > { %v2093_v37 = vadd.f32 %v2817_v47, %v2081_v6  ;;  %v2094_v10 = vadd.f32 %v2817_v47, %v2082_v29  ;;  %v2095_v39 = vadd.f32 %v2817_v47, %v2083_v13  ;;  %v2096_v40 = vadd.f32 %v2817_v47, %v2084_v19 }
 0x768   : > { %vm2097_vm7 = vcmp.ge.f32.partialorder %v2089_v21, 0.0  ;;  %vm2098_vm8 = vcmp.ge.f32.partialorder %v2090_v31, 0.0  ;;  %vm2099_vm9 = vcmp.ge.f32.partialorder %v2091_v33, 0.0  ;;  %vm2100_vm10 = vcmp.ge.f32.partialorder %v2092_v32, 0.0 }
 0x769   : > { %v2106_v17 = vmul.f32 %v2105_v11, %v2089_v21  ;;  %v2107_v12 = vmul.f32 %v2105_v11, %v2090_v31  ;;  %v2108_v42 = vmul.f32 %v2105_v11, %v2091_v33  ;;  %v2109_v22 = vmul.f32 %v2105_v11, %v2092_v32 }
 0x76a   : > { %vm2101_vm11 = vcmp.ge.f32.partialorder %v2093_v37, 0.0  ;;  %vm2102_vm12 = vcmp.ge.f32.partialorder %v2094_v10, 0.0  ;;  %v2110_v26 = vmul.f32 %v2105_v11, %v2093_v37  ;;  %v2111_v38 = vmul.f32 %v2105_v11, %v2094_v10 }
 0x76b   : > { %v2112_v0 = vmul.f32 %v2105_v11, %v2095_v39  ;;  %v2114_v56 = vsel %vm2097_vm7, %v2089_v21, %v2106_v17  ;;  %v2115_v30 = vsel %vm2098_vm8, %v2090_v31, %v2107_v12  ;;  %v2116_v41 = vsel %vm2099_vm9, %v2091_v33, %v2108_v42 }
 0x76c   : > { %vm2103_vm13 = vcmp.ge.f32.partialorder %v2095_v39, 0.0  ;;  %v2113_v9 = vmul.f32 %v2105_v11, %v2096_v40  ;;  %v2117_v25 = vsel %vm2100_vm10, %v2092_v32, %v2109_v22  ;;  %2122 = vst [vmem:[%s663_s28] sm:$0xff] %v2114_v56  ;;  %vm2104_vm14 = vcmp.ge.f32.partialorder %v2096_v40, 0.0 }
 0x76d   : > { %v2118_v44 = vsel %vm2101_vm11, %v2093_v37, %v2110_v26  ;;  %2123 = vst [vmem:[%s663_s28 + $0x8] sm:$0xff] %v2115_v30  ;;  %v2119_v1 = vsel %vm2102_vm12, %v2094_v10, %v2111_v38  ;;  %v2120_v15 = vsel %vm2103_vm13, %v2095_v39, %v2112_v0 }
 0x76e   : > { %2124 = vst [vmem:[%s663_s28 + $0x10] sm:$0xff] %v2116_v41  ;;  %v2121_v27 = vsel %vm2104_vm14, %v2096_v40, %v2113_v9 }
 0x76f   : > { %2125 = vst [vmem:[%s663_s28 + $0x18] sm:$0xff] %v2117_v25 }
 0x770   : > { %2126 = vst [vmem:[%s663_s28 + $0x20] sm:$0xff] %v2118_v44 }
 0x771   : > { %2127 = vst [vmem:[%s663_s28 + $0x28] sm:$0xff] %v2119_v1 }
 0x772   : > { %2128 = vst [vmem:[%s663_s28 + $0x30] sm:$0xff] %v2120_v15 }
 0x773   : > { %2129 = vst [vmem:[%s663_s28 + $0x38] sm:$0xff] %v2121_v27 }
 0x774   : > { %3056 = shalt.err (!%p3053_p8)
}
 0x775   : > { %s3126_s13 = smov 128   ;;  %s3127_s17 = smov 8  }
 0x776   : > { %2725 = dma.vmem_to_hbm [thread:$0]  (%p3315_p0), %s2144_s20, 1024, %s2146_s8, %s2131_s26, %s3126_s13, %s3126_s13, %s3127_s17  }
 0x777 PF: > { %s3816_s7 = sld [smem:[#allocation23_spill]]  ;;  %p3818_p10 = scmp.ge.s32.totalorder %s3115_s24, 2 }
 0x779   : > { %p2751_p11 = pnand %p3818_p10, %p3323_p6 }
 0x77b   : > { %p2752_p12 = pneg %p2751_p11 }
 0x77d   : > { %s2160_s30 = sand.u32 1, %s3816_s7  }
 0x77e   : > { %s2161_s25 = scalar_lea.sflag [#allocation4], %s2160_s30 }
 0x77f   : > { %3098 = dma.done.wait (%p2752_p12), %s2161_s25, 1024  }
 0x780   : > { %3100 = vsyncadd (%p2752_p12), %s2161_s25, 4294966272  ;;  %s3819_s24 = sld [smem:[#allocation25_spill]]  ;;  %s3822_s21 = smov %s3107_s22 }
 0x781   : > { %s3820_s29 = sld [smem:[#allocation24_spill]] }
 0x782   : > { %s3821_s23 = sld [smem:[#allocation26_spill]] }
 0x786   : > { %p35_p2 = scmp.ge.s32.totalorder %s3819_s24, 4  }
 0x787   : > { %s3823_s22 = smov %s3820_s29 }
 0x788   :  { %37 = sbr.rel (!%p35_p2) target bundleno = 21 (0x15), region = 163 }
 0x78d   :  { %2167 = vsyncpa [#allocation3], 1 }
 0x78e   :  { %2169 = vsyncpa [#allocation3 + $0x1], 1 }
 0x78f   :  { %2170 = vsyncpa [#allocation7], 1 }
 0x790   :  { %2172 = vsyncpa [#allocation7 + $0x1], 1 }
 0x791   :  { %2173 = vsyncpa [#allocation10], 1 }
 0x792   :  { %2174 = vsyncpa [#allocation13], 1 }
 0x793   :  { %2175 = vsyncpa [#allocation4], 1 }
 0x794   :  { %2177 = vsyncpa [#allocation4 + $0x1], 1 }
 0x795   :  { %2178 = vsyncpa [#allocation5], 1 }
 0x796   :  { %2180 = vsyncpa [#allocation5 + $0x1], 1 }

</bundles_post_ra>
